<compile_context>
chip_gen: v7x
topology: tpu7x:2x2x1
jax: 0.10.0
libtpu: 0.0.40
codegen_flags: <defaults>
</compile_context>

<pallas_src>
import jax
import jax.numpy as jnp
from jax import lax
from jax.experimental import pallas as pl
from jax.experimental.pallas import tpu as pltpu

LN_EPS = 1e-5                      # PyTorch nn.LayerNorm default eps
_INV_SQRT2 = 0.7071067811865476


# --------------------------------------------------------------------------- #
# small math helpers (run inside the kernel)
# --------------------------------------------------------------------------- #
def _layernorm(t, g, b):
    mu = jnp.mean(t, axis=-1, keepdims=True)
    var = jnp.mean(jnp.square(t - mu), axis=-1, keepdims=True)
    return (t - mu) * lax.rsqrt(var + LN_EPS) * g + b


def _gelu_exact(t):
    # PyTorch nn.GELU() default = exact (erf) formulation.
    return 0.5 * t * (1.0 + lax.erf(t * _INV_SQRT2))


# --------------------------------------------------------------------------- #
# fused kernel: all layers + final norm, one row block per grid step on axis 0
# --------------------------------------------------------------------------- #
def make_kernel(heads, dim_head, n_seq, m_seq, bb, depth, self_attend):
    n, m, dh = n_seq, m_seq, dim_head

    def body(x_ref, ctx_ref, ln1g, ln1b, wq, wk, wv, wo, bo, ln2g, ln2b,
             w1, b1, w2, b2, fng, fnb, o_ref, y_ref, oc_ref):
        l = pl.program_id(1)

        # Residual stream lives in VMEM scratch across the whole depth loop.
        @pl.when(l == 0)
        def _():
            y_ref[...] = x_ref[...]

        y = y_ref[...]                                        # (R, D) f32

        # ---------------- PreNorm + Attention -----------------------------
        xn = _layernorm(y, ln1g[0], ln1b[0])
        xnb = xn.astype(jnp.bfloat16)
        kvb = xnb if self_attend else ctx_ref[...].astype(jnp.bfloat16)

        # Head-major projections (full K = dim contraction, no lane slicing
        # of q/k/v).  Each head's attention context is stored directly into
        # the (R, inner) bf16 VMEM scratch -> no accumulator survives the
        # static loops and no concatenate is needed.
        for h in range(heads):
            qh = jnp.dot(xnb, wq[0, h],
                         preferred_element_type=jnp.float32).astype(jnp.bfloat16)
            kh = jnp.dot(kvb, wk[0, h],
                         preferred_element_type=jnp.float32).astype(jnp.bfloat16)
            vh = jnp.dot(kvb, wv[0, h],
                         preferred_element_type=jnp.float32).astype(jnp.bfloat16)
            for ib in range(bb):                      # static batch loop
                q_i = qh[ib * n:(ib + 1) * n, :]
                k_i = kh[ib * m:(ib + 1) * m, :]
                v_i = vh[ib * m:(ib + 1) * m, :]
                # q @ k^T via dot_general contracting last dims (no transpose).
                s = lax.dot_general(q_i, k_i, (((1,), (1,)), ((), ())),
                                    preferred_element_type=jnp.float32)
                s = s - jnp.max(s, axis=-1, keepdims=True)
                e = jnp.exp(s)
                p = e * pl.reciprocal(jnp.sum(e, axis=-1, keepdims=True),
                                      approx=True)
                ctx_h = jnp.dot(p.astype(jnp.bfloat16), v_i,
                                preferred_element_type=jnp.float32)
                oc_ref[ib * n:(ib + 1) * n, h * dh:(h + 1) * dh] = (
                    ctx_h.astype(jnp.bfloat16))

        # Single deep output projection: (R, inner) @ (inner, D).
        attn_out = jnp.dot(oc_ref[...], wo[0],
                           preferred_element_type=jnp.float32)
        y = y + attn_out + bo[0]

        # ---------------- PreNorm + FeedForward ----------------------------
        yn = _layernorm(y, ln2g[0], ln2b[0])
        h1 = jnp.dot(yn.astype(jnp.bfloat16), w1[0],
                     preferred_element_type=jnp.float32) + b1[0]
        h1 = _gelu_exact(h1)
        h2 = jnp.dot(h1.astype(jnp.bfloat16), w2[0],
                     preferred_element_type=jnp.float32) + b2[0]
        y = y + h2
        y_ref[...] = y

        # Final LayerNorm fused into the last layer's epilogue.
        @pl.when(l == depth - 1)
        def _():
            o_ref[...] = _layernorm(y, fng[...], fnb[...])

    if self_attend:
        def kernel(x_ref, ln1g, ln1b, wq, wk, wv, wo, bo, ln2g, ln2b,
                   w1, b1, w2, b2, fng, fnb, o_ref, y_ref, oc_ref):
            body(x_ref, None, ln1g, ln1b, wq, wk, wv, wo, bo, ln2g, ln2b,
                 w1, b1, w2, b2, fng, fnb, o_ref, y_ref, oc_ref)
    else:
        def kernel(x_ref, ctx_ref, ln1g, ln1b, wq, wk, wv, wo, bo, ln2g, ln2b,
                   w1, b1, w2, b2, fng, fnb, o_ref, y_ref, oc_ref):
            body(x_ref, ctx_ref, ln1g, ln1b, wq, wk, wv, wo, bo, ln2g, ln2b,
                 w1, b1, w2, b2, fng, fnb, o_ref, y_ref, oc_ref)
    return kernel


# --------------------------------------------------------------------------- #
# generation-aware block / VMEM sizing
# --------------------------------------------------------------------------- #
def _tpu_vmem_capacity():
    try:
        return int(pltpu.get_tpu_info().vmem_capacity_bytes)
    except Exception:
        return 64 << 20            # conservative (v7x per-core VMEM)


def _estimate_vmem_bytes(bb, n, m, dim, inner, mlp_dim, self_attend):
    """Rough per-core VMEM footprint for one grid step (bytes)."""
    r = bb * n
    rkv = r if self_attend else bb * m
    bf, f4 = 2, 4
    # stacked per-layer weights: double-buffered (prefetch of layer l+1)
    w_layer = (3 * dim * inner + inner * dim + 2 * dim * mlp_dim) * bf
    w_layer += (5 * dim + mlp_dim) * f4                  # biases + LN params
    weights = 2 * w_layer
    acts = 2 * r * dim * f4                              # x block (2 bufs)
    if not self_attend:
        acts += 2 * rkv * dim * f4                       # context block
    outs = 2 * r * dim * f4                              # output block
    scratch = r * dim * f4 + r * inner * bf              # residual + head ctx
    interm = r * mlp_dim * f4 + 3 * rkv * inner * bf + 4 * r * dim * f4
    return weights + acts + outs + scratch + interm + (2 << 20)


def _pick_batch_block(B, N, M, dim, inner, mlp_dim, self_attend,
                      vmem_limit, row_target):
    """Batch elements per grid step: biggest bb that (a) divides B, (b) keeps
    block rows 8-aligned (or full), (c) fits the VMEM budget, (d) stays at or
    under the generation's row target and (e) leaves >= 2 row blocks so both
    v7x TensorCores get work."""
    def valid(bb):
        rows_ok = (bb * N) % 8 == 0 or bb == B
        kv_ok = self_attend or (bb * M) % 8 == 0 or bb == B
        two_blocks_ok = (B < 2) or (B // bb >= 2)
        fits = _estimate_vmem_bytes(bb, N, M, dim, inner, mlp_dim,
                                    self_attend) <= vmem_limit
        return rows_ok and kv_ok and two_blocks_ok and fits

    cands = [d for d in range(1, B + 1) if B % d == 0 and valid(d)]
    if cands:
        under = [d for d in cands if d * N <= row_target]
        return max(under) if under else min(cands)
    relaxed = [d for d in range(1, B + 1) if B % d == 0
               and ((d * N) % 8 == 0 or d == B)
               and (self_attend or (d * M) % 8 == 0 or d == B)]
    return min(relaxed) if relaxed else B


def _layer_param_spec(p):
    zeros = (0,) * (p.ndim - 1)
    return pl.BlockSpec((1,) + tuple(p.shape[1:]),
                        lambda i, l, _z=zeros: (l,) + _z)


# --------------------------------------------------------------------------- #
# wrapper
# --------------------------------------------------------------------------- #
def transformer_forward(x, params, heads, dim_head, context=None):
    B, N, D = x.shape
    depth = params["wq"].shape[0]
    inner = heads * dim_head
    mlp_dim = params["w1"].shape[-1]
    self_attend = context is None
    M = N if self_attend else context.shape[1]

    vmem_cap = _tpu_vmem_capacity()
    vmem_limit = min(int(vmem_cap * 0.72), vmem_cap - (12 << 20))
    row_target = 512 if vmem_cap >= (96 << 20) else 256
    bb = _pick_batch_block(B, N, M, D, inner, mlp_dim, self_attend,
                           vmem_limit, row_target)

    R = bb * N
    Rkv = bb * M
    grid = (B // bb, depth)

    inputs = [x.reshape(B * N, D)]
    in_specs = [pl.BlockSpec((R, D), lambda i, l: (i, 0))]
    if not self_attend:
        inputs.append(context.reshape(B * M, D))
        in_specs.append(pl.BlockSpec((Rkv, D), lambda i, l: (i, 0)))

    layer_names = ["ln1g", "ln1b", "wq", "wk", "wv", "wo", "bo",
                   "ln2g", "ln2b", "w1", "b1", "w2", "b2"]
    for name in layer_names:
        p = params[name]
        inputs.append(p)
        in_specs.append(_layer_param_spec(p))
    for name in ("norm_g", "norm_b"):
        p = params[name]
        inputs.append(p)
        in_specs.append(pl.BlockSpec(p.shape, lambda i, l: (0, 0)))

    kernel = make_kernel(heads, dim_head, N, M, bb, depth, self_attend)

    out = pl.pallas_call(
        kernel,
        out_shape=jax.ShapeDtypeStruct((B * N, D), jnp.float32),
        grid=grid,
        in_specs=in_specs,
        out_specs=pl.BlockSpec((R, D), lambda i, l: (i, 0)),
        scratch_shapes=[pltpu.VMEM((R, D), jnp.float32),        # residual
                        pltpu.VMEM((R, inner), jnp.bfloat16)],  # head contexts
        compiler_params=pltpu.CompilerParams(
            dimension_semantics=("parallel", "arbitrary"),
            vmem_limit_bytes=vmem_limit),
    )(*inputs)
    return out.reshape(B, N, D)


# --------------------------------------------------------------------------- #
# parameter init (deterministic; layout matches the kernel)
# --------------------------------------------------------------------------- #
def init_params(key, dim, depth, heads, dim_head, mlp_dim):
    inner = heads * dim_head
    scale = dim_head ** -0.5

    def uniform(k, shape, fan_in):
        bound = 1.0 / (fan_in ** 0.5)
        return jax.random.uniform(k, shape, jnp.float32, -bound, bound)

    def head_major(w):                       # (dim, inner) -> (heads, dim, dh)
        return w.reshape(dim, heads, dim_head).transpose(1, 0, 2)

    lists = {n: [] for n in ["ln1g", "ln1b", "wq", "wk", "wv", "wo", "bo",
                             "ln2g", "ln2b", "w1", "b1", "w2", "b2"]}
    for _ in range(depth):
        key, *ks = jax.random.split(key, 10)
        lists["ln1g"].append(jnp.ones((1, dim), jnp.float32))
        lists["ln1b"].append(jnp.zeros((1, dim), jnp.float32))
        # softmax scale folded into Wq (no in-kernel multiply)
        lists["wq"].append(head_major(uniform(ks[0], (dim, inner), dim) *
                                      scale).astype(jnp.bfloat16))
        lists["wk"].append(head_major(uniform(ks[1], (dim, inner), dim)
                                      ).astype(jnp.bfloat16))
        lists["wv"].append(head_major(uniform(ks[2], (dim, inner), dim)
                                      ).astype(jnp.bfloat16))
        lists["wo"].append(uniform(ks[3], (inner, dim), inner
                                   ).astype(jnp.bfloat16))
        lists["bo"].append(uniform(ks[4], (1, dim), inner))
        lists["ln2g"].append(jnp.ones((1, dim), jnp.float32))
        lists["ln2b"].append(jnp.zeros((1, dim), jnp.float32))
        lists["w1"].append(uniform(ks[5], (dim, mlp_dim), dim
                                   ).astype(jnp.bfloat16))
        lists["b1"].append(uniform(ks[6], (1, mlp_dim), dim))
        lists["w2"].append(uniform(ks[7], (mlp_dim, dim), mlp_dim
                                   ).astype(jnp.bfloat16))
        lists["b2"].append(uniform(ks[8], (1, dim), mlp_dim))

    params = {n: jnp.stack(v, axis=0) for n, v in lists.items()}
    params["norm_g"] = jnp.ones((1, dim), jnp.float32)
    params["norm_b"] = jnp.zeros((1, dim), jnp.float32)
    return params


# --------------------------------------------------------------------------- #
# pure-JAX reference for verification
# --------------------------------------------------------------------------- #
def ref_forward(x, params, heads, dim_head, context=None):
    f32 = jnp.float32

    def ln(t, g, b):
        mu = t.mean(-1, keepdims=True)
        var = ((t - mu) ** 2).mean(-1, keepdims=True)
        return (t - mu) / jnp.sqrt(var + LN_EPS) * g + b

    B, N, D = x.shape
    depth = params["wq"].shape[0]
    inner = heads * dim_head
    for l in range(depth):
        wq = params["wq"][l].astype(f32)     # (heads, D, dh), scale folded in
        wk = params["wk"][l].astype(f32)
        wv = params["wv"][l].astype(f32)
        wo = params["wo"][l].astype(f32)     # (inner, D)
        bo = params["bo"][l]
        w1 = params["w1"][l].astype(f32)
        b1 = params["b1"][l]
        w2 = params["w2"][l].astype(f32)
        b2 = params["b2"][l]

        xn = ln(x, params["ln1g"][l], params["ln1b"][l])
        ctxv = xn if context is None else context
        q = jnp.einsum("bnd,hdk->bhnk", xn, wq)
        k = jnp.einsum("bmd,hdk->bhmk", ctxv, wk)
        v = jnp.einsum("bmd,hdk->bhmk", ctxv, wv)
        dots = jnp.einsum("bhik,bhjk->bhij", q, k)    # scale already in wq
        attn = jax.nn.softmax(dots, axis=-1)
        o = jnp.einsum("bhij,bhjk->bhik", attn, v)
        o = o.transpose(0, 2, 1, 3).reshape(B, N, inner)
        x = x + (o @ wo + bo)
        xn2 = ln(x, params["ln2g"][l], params["ln2b"][l])
        h = jax.nn.gelu(xn2 @ w1 + b1, approximate=False)
        x = x + (h @ w2 + b2)
    return ln(x, params["norm_g"], params["norm_b"])


# --------------------------------------------------------------------------- #
if __name__ == "__main__":
    # Small shapes consistent with Transformer(dim, depth, heads, dim_head, mlp_dim)
    B, N, M = 2, 8, 16
    dim, depth, heads, dim_head, mlp_dim = 32, 2, 4, 8, 64

    key = jax.random.PRNGKey(0)
    kx, kc, kp = jax.random.split(key, 3)
    x = jax.random.normal(kx, (B, N, dim), jnp.float32)
    ctx = jax.random.normal(kc, (B, M, dim), jnp.float32)
    params = init_params(kp, dim, depth, heads, dim_head, mlp_dim)

    # Self-attention path (context=None).
    out = transformer_forward(x, params, heads, dim_head, context=None)
    out = jax.block_until_ready(out)
    ref = ref_forward(x, params, heads, dim_head, context=None)
    assert out.shape == (B, N, dim)
    assert jnp.allclose(out, ref, rtol=5e-2, atol=5e-2), (
        float(jnp.max(jnp.abs(out - ref))))

    # Cross-attention path (raw context as K/V source, matching PreNorm(Attention)).
    out_x = transformer_forward(x, params, heads, dim_head, context=ctx)
    out_x = jax.block_until_ready(out_x)
    ref_x = ref_forward(x, params, heads, dim_head, context=ctx)
    assert jnp.allclose(out_x, ref_x, rtol=5e-2, atol=5e-2), (
        float(jnp.max(jnp.abs(out_x - ref_x))))

    print("KERNEL_OK")
</pallas_src>

<mosaic_0001>
module attributes {stable_mosaic.version = 11 : i64} {
  func.func @kernel(%arg0: i32, %arg1: i32, %arg2: memref<8x32xf32, #tpu.memory_space<vmem>>, %arg3: memref<1x1x32xf32, #tpu.memory_space<vmem>>, %arg4: memref<1x1x32xf32, #tpu.memory_space<vmem>>, %arg5: memref<1x4x32x8xbf16, #tpu.memory_space<vmem>>, %arg6: memref<1x4x32x8xbf16, #tpu.memory_space<vmem>>, %arg7: memref<1x4x32x8xbf16, #tpu.memory_space<vmem>>, %arg8: memref<1x32x32xbf16, #tpu.memory_space<vmem>>, %arg9: memref<1x1x32xf32, #tpu.memory_space<vmem>>, %arg10: memref<1x1x32xf32, #tpu.memory_space<vmem>>, %arg11: memref<1x1x32xf32, #tpu.memory_space<vmem>>, %arg12: memref<1x32x64xbf16, #tpu.memory_space<vmem>>, %arg13: memref<1x1x64xf32, #tpu.memory_space<vmem>>, %arg14: memref<1x64x32xbf16, #tpu.memory_space<vmem>>, %arg15: memref<1x1x32xf32, #tpu.memory_space<vmem>>, %arg16: memref<1x32xf32, #tpu.memory_space<vmem>>, %arg17: memref<1x32xf32, #tpu.memory_space<vmem>>, %arg18: memref<8x32xf32, #tpu.memory_space<vmem>>, %arg19: memref<8x32xf32, #tpu.memory_space<vmem>>, %arg20: memref<8x32xbf16, #tpu.memory_space<vmem>>) attributes {dimension_semantics = [#tpu.dimension_semantics<parallel>, #tpu.dimension_semantics<arbitrary>], iteration_bounds = array<i64: 2, 2>, scalar_prefetch = 0 : i64, scratch_operands = 2 : i64, tpu.core_type = #tpu.core_type<tc>, window_params = [{transform_indices = @transform_0, window_bounds = array<i64: 8, 32>}, {transform_indices = @transform_1, window_bounds = array<i64: 1, 1, 32>}, {transform_indices = @transform_2, window_bounds = array<i64: 1, 1, 32>}, {transform_indices = @transform_3, window_bounds = array<i64: 1, 4, 32, 8>}, {transform_indices = @transform_4, window_bounds = array<i64: 1, 4, 32, 8>}, {transform_indices = @transform_5, window_bounds = array<i64: 1, 4, 32, 8>}, {transform_indices = @transform_6, window_bounds = array<i64: 1, 32, 32>}, {transform_indices = @transform_7, window_bounds = array<i64: 1, 1, 32>}, {transform_indices = @transform_8, window_bounds = array<i64: 1, 1, 32>}, {transform_indices = @transform_9, window_bounds = array<i64: 1, 1, 32>}, {transform_indices = @transform_10, window_bounds = array<i64: 1, 32, 64>}, {transform_indices = @transform_11, window_bounds = array<i64: 1, 1, 64>}, {transform_indices = @transform_12, window_bounds = array<i64: 1, 64, 32>}, {transform_indices = @transform_13, window_bounds = array<i64: 1, 1, 32>}, {pipeline_mode = #tpu.pipeline_mode<synchronous>, transform_indices = @transform_14, window_bounds = array<i64: 1, 32>}, {pipeline_mode = #tpu.pipeline_mode<synchronous>, transform_indices = @transform_15, window_bounds = array<i64: 1, 32>}, {transform_indices = @transform_16, window_bounds = array<i64: 8, 32>}]} {
    %c0_i32 = arith.constant 0 : i32
    %0 = arith.cmpi eq, %arg1, %c0_i32 : i32
    %1 = arith.extui %0 : i1 to i32
    %c0_i32_0 = arith.constant 0 : i32
    %2 = arith.cmpi ne, %1, %c0_i32_0 : i32
    scf.if %2 {
      %c0_130 = arith.constant 0 : index
      %c0_131 = arith.constant 0 : index
      %203 = vector.load %arg2[%c0_130, %c0_131] : memref<8x32xf32, #tpu.memory_space<vmem>>, vector<8x32xf32>
      %c0_132 = arith.constant 0 : index
      %c0_133 = arith.constant 0 : index
      %204 = vector.load %arg19[%c0_132, %c0_133] : memref<8x32xf32, #tpu.memory_space<vmem>>, vector<8x32xf32>
      tpu.vector_store %arg19[%c0_132, %c0_133], %203 {strides = array<i32>} : memref<8x32xf32, #tpu.memory_space<vmem>>, vector<8x32xf32>,
    } else {
    }
    %c0 = arith.constant 0 : index
    %c0_1 = arith.constant 0 : index
    %3 = vector.load %arg19[%c0, %c0_1] : memref<8x32xf32, #tpu.memory_space<vmem>>, vector<8x32xf32>
    %c0_2 = arith.constant 0 : index
    %c0_3 = arith.constant 0 : index
    %c0_4 = arith.constant 0 : index
    %4 = vector.load %arg3[%c0_2, %c0_3, %c0_4] : memref<1x1x32xf32, #tpu.memory_space<vmem>>, vector<1x1x32xf32>
    %5 = vector.shape_cast %4 : vector<1x1x32xf32> to vector<1x32xf32>
    %c0_5 = arith.constant 0 : index
    %c0_6 = arith.constant 0 : index
    %c0_7 = arith.constant 0 : index
    %6 = vector.load %arg4[%c0_5, %c0_6, %c0_7] : memref<1x1x32xf32, #tpu.memory_space<vmem>>, vector<1x1x32xf32>
    %7 = vector.shape_cast %6 : vector<1x1x32xf32> to vector<1x32xf32>
    %cst = arith.constant dense<0.000000e+00> : vector<8xf32>
    %8 = vector.multi_reduction <add>, %3, %cst [1] : vector<8x32xf32> to vector<8xf32>
    %9 = vector.shape_cast %8 : vector<8xf32> to vector<8x1xf32>
    %cst_8 = arith.constant 3.200000e+01 : f32
    %10 = vector.broadcast %cst_8 : f32 to vector<8x1xf32>
    %11 = arith.divf %9, %10 : vector<8x1xf32>
    %12 = vector.broadcast %11 : vector<8x1xf32> to vector<8x32xf32>
    %13 = arith.subf %3, %12 : vector<8x32xf32>
    %14 = arith.mulf %13, %13 : vector<8x32xf32>
    %cst_9 = arith.constant dense<0.000000e+00> : vector<8xf32>
    %15 = vector.multi_reduction <add>, %14, %cst_9 [1] : vector<8x32xf32> to vector<8xf32>
    %16 = vector.shape_cast %15 : vector<8xf32> to vector<8x1xf32>
    %cst_10 = arith.constant 3.200000e+01 : f32
    %17 = vector.broadcast %cst_10 : f32 to vector<8x1xf32>
    %18 = arith.divf %16, %17 : vector<8x1xf32>
    %19 = vector.broadcast %11 : vector<8x1xf32> to vector<8x32xf32>
    %20 = arith.subf %3, %19 : vector<8x32xf32>
    %cst_11 = arith.constant 9.99999974E-6 : f32
    %21 = vector.broadcast %cst_11 : f32 to vector<8x1xf32>
    %22 = arith.addf %18, %21 : vector<8x1xf32>
    %23 = math.rsqrt %22 : vector<8x1xf32>
    %24 = vector.broadcast %23 : vector<8x1xf32> to vector<8x32xf32>
    %25 = arith.mulf %20, %24 : vector<8x32xf32>
    %26 = vector.broadcast %5 : vector<1x32xf32> to vector<8x32xf32>
    %27 = arith.mulf %25, %26 : vector<8x32xf32>
    %28 = vector.broadcast %7 : vector<1x32xf32> to vector<8x32xf32>
    %29 = arith.addf %27, %28 : vector<8x32xf32>
    %30 = arith.truncf %29 : vector<8x32xf32> to vector<8x32xbf16>
    %c0_12 = arith.constant 0 : index
    %c0_13 = arith.constant 0 : index
    %c0_14 = arith.constant 0 : index
    %c0_15 = arith.constant 0 : index
    %31 = vector.load %arg5[%c0_12, %c0_13, %c0_14, %c0_15] : memref<1x4x32x8xbf16, #tpu.memory_space<vmem>>, vector<1x1x32x8xbf16>
    %32 = vector.shape_cast %31 : vector<1x1x32x8xbf16> to vector<32x8xbf16>
    %cst_16 = arith.constant dense<0.000000e+00> : vector<8x8xf32>
    %33 = tpu.matmul %30, %32, %cst_16 {dimension_numbers = #tpu.dot_dimension_numbers<[1], [0], [0], [1], [0, 0, 1, 1], [], []>} : vector<8x32xbf16>, vector<32x8xbf16>, vector<8x8xf32> -> vector<8x8xf32>
    %34 = arith.truncf %33 : vector<8x8xf32> to vector<8x8xbf16>
    %c0_17 = arith.constant 0 : index
    %c0_18 = arith.constant 0 : index
    %c0_19 = arith.constant 0 : index
    %c0_20 = arith.constant 0 : index
    %35 = vector.load %arg6[%c0_17, %c0_18, %c0_19, %c0_20] : memref<1x4x32x8xbf16, #tpu.memory_space<vmem>>, vector<1x1x32x8xbf16>
    %36 = vector.shape_cast %35 : vector<1x1x32x8xbf16> to vector<32x8xbf16>
    %cst_21 = arith.constant dense<0.000000e+00> : vector<8x8xf32>
    %37 = tpu.matmul %30, %36, %cst_21 {dimension_numbers = #tpu.dot_dimension_numbers<[1], [0], [0], [1], [0, 0, 1, 1], [], []>} : vector<8x32xbf16>, vector<32x8xbf16>, vector<8x8xf32> -> vector<8x8xf32>
    %38 = arith.truncf %37 : vector<8x8xf32> to vector<8x8xbf16>
    %c0_22 = arith.constant 0 : index
    %c0_23 = arith.constant 0 : index
    %c0_24 = arith.constant 0 : index
    %c0_25 = arith.constant 0 : index
    %39 = vector.load %arg7[%c0_22, %c0_23, %c0_24, %c0_25] : memref<1x4x32x8xbf16, #tpu.memory_space<vmem>>, vector<1x1x32x8xbf16>
    %40 = vector.shape_cast %39 : vector<1x1x32x8xbf16> to vector<32x8xbf16>
    %cst_26 = arith.constant dense<0.000000e+00> : vector<8x8xf32>
    %41 = tpu.matmul %30, %40, %cst_26 {dimension_numbers = #tpu.dot_dimension_numbers<[1], [0], [0], [1], [0, 0, 1, 1], [], []>} : vector<8x32xbf16>, vector<32x8xbf16>, vector<8x8xf32> -> vector<8x8xf32>
    %42 = arith.truncf %41 : vector<8x8xf32> to vector<8x8xbf16>
    %cst_27 = arith.constant dense<0.000000e+00> : vector<8x8xf32>
    %43 = tpu.matmul %34, %38, %cst_27 {dimension_numbers = #tpu.dot_dimension_numbers<[1], [1], [0], [0], [0, 0, 1, 0], [], []>} : vector<8x8xbf16>, vector<8x8xbf16>, vector<8x8xf32> -> vector<8x8xf32>
    %cst_28 = arith.constant dense<0xFF800000> : vector<8xf32>
    %44 = vector.multi_reduction <maximumf>, %43, %cst_28 [1] : vector<8x8xf32> to vector<8xf32>
    %45 = vector.shape_cast %44 : vector<8xf32> to vector<8x1xf32>
    %46 = vector.broadcast %45 : vector<8x1xf32> to vector<8x8xf32>
    %47 = arith.subf %43, %46 : vector<8x8xf32>
    %48 = math.exp %47 : vector<8x8xf32>
    %cst_29 = arith.constant dense<0.000000e+00> : vector<8xf32>
    %49 = vector.multi_reduction <add>, %48, %cst_29 [1] : vector<8x8xf32> to vector<8xf32>
    %50 = vector.shape_cast %49 : vector<8xf32> to vector<8x1xf32>
    %51 = tpu.reciprocal %50 {approx = true} : vector<8x1xf32> -> vector<8x1xf32>
    %52 = vector.broadcast %51 : vector<8x1xf32> to vector<8x8xf32>
    %53 = arith.mulf %48, %52 : vector<8x8xf32>
    %54 = arith.truncf %53 : vector<8x8xf32> to vector<8x8xbf16>
    %cst_30 = arith.constant dense<0.000000e+00> : vector<8x8xf32>
    %55 = tpu.matmul %54, %42, %cst_30 {dimension_numbers = #tpu.dot_dimension_numbers<[1], [0], [0], [1], [0, 0, 1, 1], [], []>} : vector<8x8xbf16>, vector<8x8xbf16>, vector<8x8xf32> -> vector<8x8xf32>
    %56 = arith.truncf %55 : vector<8x8xf32> to vector<8x8xbf16>
    %c0_31 = arith.constant 0 : index
    %c0_32 = arith.constant 0 : index
    %57 = vector.load %arg20[%c0_31, %c0_32] : memref<8x32xbf16, #tpu.memory_space<vmem>>, vector<8x8xbf16>
    tpu.vector_store %arg20[%c0_31, %c0_32], %56 {strides = array<i32>} : memref<8x32xbf16, #tpu.memory_space<vmem>>, vector<8x8xbf16>,
    %c0_33 = arith.constant 0 : index
    %c1 = arith.constant 1 : index
    %c0_34 = arith.constant 0 : index
    %c0_35 = arith.constant 0 : index
    %58 = vector.load %arg5[%c0_33, %c1, %c0_34, %c0_35] : memref<1x4x32x8xbf16, #tpu.memory_space<vmem>>, vector<1x1x32x8xbf16>
    %59 = vector.shape_cast %58 : vector<1x1x32x8xbf16> to vector<32x8xbf16>
    %cst_36 = arith.constant dense<0.000000e+00> : vector<8x8xf32>
    %60 = tpu.matmul %30, %59, %cst_36 {dimension_numbers = #tpu.dot_dimension_numbers<[1], [0], [0], [1], [0, 0, 1, 1], [], []>} : vector<8x32xbf16>, vector<32x8xbf16>, vector<8x8xf32> -> vector<8x8xf32>
    %61 = arith.truncf %60 : vector<8x8xf32> to vector<8x8xbf16>
    %c0_37 = arith.constant 0 : index
    %c1_38 = arith.constant 1 : index
    %c0_39 = arith.constant 0 : index
    %c0_40 = arith.constant 0 : index
    %62 = vector.load %arg6[%c0_37, %c1_38, %c0_39, %c0_40] : memref<1x4x32x8xbf16, #tpu.memory_space<vmem>>, vector<1x1x32x8xbf16>
    %63 = vector.shape_cast %62 : vector<1x1x32x8xbf16> to vector<32x8xbf16>
    %cst_41 = arith.constant dense<0.000000e+00> : vector<8x8xf32>
    %64 = tpu.matmul %30, %63, %cst_41 {dimension_numbers = #tpu.dot_dimension_numbers<[1], [0], [0], [1], [0, 0, 1, 1], [], []>} : vector<8x32xbf16>, vector<32x8xbf16>, vector<8x8xf32> -> vector<8x8xf32>
    %65 = arith.truncf %64 : vector<8x8xf32> to vector<8x8xbf16>
    %c0_42 = arith.constant 0 : index
    %c1_43 = arith.constant 1 : index
    %c0_44 = arith.constant 0 : index
    %c0_45 = arith.constant 0 : index
    %66 = vector.load %arg7[%c0_42, %c1_43, %c0_44, %c0_45] : memref<1x4x32x8xbf16, #tpu.memory_space<vmem>>, vector<1x1x32x8xbf16>
    %67 = vector.shape_cast %66 : vector<1x1x32x8xbf16> to vector<32x8xbf16>
    %cst_46 = arith.constant dense<0.000000e+00> : vector<8x8xf32>
    %68 = tpu.matmul %30, %67, %cst_46 {dimension_numbers = #tpu.dot_dimension_numbers<[1], [0], [0], [1], [0, 0, 1, 1], [], []>} : vector<8x32xbf16>, vector<32x8xbf16>, vector<8x8xf32> -> vector<8x8xf32>
    %69 = arith.truncf %68 : vector<8x8xf32> to vector<8x8xbf16>
    %cst_47 = arith.constant dense<0.000000e+00> : vector<8x8xf32>
    %70 = tpu.matmul %61, %65, %cst_47 {dimension_numbers = #tpu.dot_dimension_numbers<[1], [1], [0], [0], [0, 0, 1, 0], [], []>} : vector<8x8xbf16>, vector<8x8xbf16>, vector<8x8xf32> -> vector<8x8xf32>
    %cst_48 = arith.constant dense<0xFF800000> : vector<8xf32>
    %71 = vector.multi_reduction <maximumf>, %70, %cst_48 [1] : vector<8x8xf32> to vector<8xf32>
    %72 = vector.shape_cast %71 : vector<8xf32> to vector<8x1xf32>
    %73 = vector.broadcast %72 : vector<8x1xf32> to vector<8x8xf32>
    %74 = arith.subf %70, %73 : vector<8x8xf32>
    %75 = math.exp %74 : vector<8x8xf32>
    %cst_49 = arith.constant dense<0.000000e+00> : vector<8xf32>
    %76 = vector.multi_reduction <add>, %75, %cst_49 [1] : vector<8x8xf32> to vector<8xf32>
    %77 = vector.shape_cast %76 : vector<8xf32> to vector<8x1xf32>
    %78 = tpu.reciprocal %77 {approx = true} : vector<8x1xf32> -> vector<8x1xf32>
    %79 = vector.broadcast %78 : vector<8x1xf32> to vector<8x8xf32>
    %80 = arith.mulf %75, %79 : vector<8x8xf32>
    %81 = arith.truncf %80 : vector<8x8xf32> to vector<8x8xbf16>
    %cst_50 = arith.constant dense<0.000000e+00> : vector<8x8xf32>
    %82 = tpu.matmul %81, %69, %cst_50 {dimension_numbers = #tpu.dot_dimension_numbers<[1], [0], [0], [1], [0, 0, 1, 1], [], []>} : vector<8x8xbf16>, vector<8x8xbf16>, vector<8x8xf32> -> vector<8x8xf32>
    %83 = arith.truncf %82 : vector<8x8xf32> to vector<8x8xbf16>
    %c0_51 = arith.constant 0 : index
    %c8 = arith.constant 8 : index
    %84 = vector.load %arg20[%c0_51, %c8] : memref<8x32xbf16, #tpu.memory_space<vmem>>, vector<8x8xbf16>
    tpu.vector_store %arg20[%c0_51, %c8], %83 {strides = array<i32>} : memref<8x32xbf16, #tpu.memory_space<vmem>>, vector<8x8xbf16>,
    %c0_52 = arith.constant 0 : index
    %c2 = arith.constant 2 : index
    %c0_53 = arith.constant 0 : index
    %c0_54 = arith.constant 0 : index
    %85 = vector.load %arg5[%c0_52, %c2, %c0_53, %c0_54] : memref<1x4x32x8xbf16, #tpu.memory_space<vmem>>, vector<1x1x32x8xbf16>
    %86 = vector.shape_cast %85 : vector<1x1x32x8xbf16> to vector<32x8xbf16>
    %cst_55 = arith.constant dense<0.000000e+00> : vector<8x8xf32>
    %87 = tpu.matmul %30, %86, %cst_55 {dimension_numbers = #tpu.dot_dimension_numbers<[1], [0], [0], [1], [0, 0, 1, 1], [], []>} : vector<8x32xbf16>, vector<32x8xbf16>, vector<8x8xf32> -> vector<8x8xf32>
    %88 = arith.truncf %87 : vector<8x8xf32> to vector<8x8xbf16>
    %c0_56 = arith.constant 0 : index
    %c2_57 = arith.constant 2 : index
    %c0_58 = arith.constant 0 : index
    %c0_59 = arith.constant 0 : index
    %89 = vector.load %arg6[%c0_56, %c2_57, %c0_58, %c0_59] : memref<1x4x32x8xbf16, #tpu.memory_space<vmem>>, vector<1x1x32x8xbf16>
    %90 = vector.shape_cast %89 : vector<1x1x32x8xbf16> to vector<32x8xbf16>
    %cst_60 = arith.constant dense<0.000000e+00> : vector<8x8xf32>
    %91 = tpu.matmul %30, %90, %cst_60 {dimension_numbers = #tpu.dot_dimension_numbers<[1], [0], [0], [1], [0, 0, 1, 1], [], []>} : vector<8x32xbf16>, vector<32x8xbf16>, vector<8x8xf32> -> vector<8x8xf32>
    %92 = arith.truncf %91 : vector<8x8xf32> to vector<8x8xbf16>
    %c0_61 = arith.constant 0 : index
    %c2_62 = arith.constant 2 : index
    %c0_63 = arith.constant 0 : index
    %c0_64 = arith.constant 0 : index
    %93 = vector.load %arg7[%c0_61, %c2_62, %c0_63, %c0_64] : memref<1x4x32x8xbf16, #tpu.memory_space<vmem>>, vector<1x1x32x8xbf16>
    %94 = vector.shape_cast %93 : vector<1x1x32x8xbf16> to vector<32x8xbf16>
    %cst_65 = arith.constant dense<0.000000e+00> : vector<8x8xf32>
    %95 = tpu.matmul %30, %94, %cst_65 {dimension_numbers = #tpu.dot_dimension_numbers<[1], [0], [0], [1], [0, 0, 1, 1], [], []>} : vector<8x32xbf16>, vector<32x8xbf16>, vector<8x8xf32> -> vector<8x8xf32>
    %96 = arith.truncf %95 : vector<8x8xf32> to vector<8x8xbf16>
    %cst_66 = arith.constant dense<0.000000e+00> : vector<8x8xf32>
    %97 = tpu.matmul %88, %92, %cst_66 {dimension_numbers = #tpu.dot_dimension_numbers<[1], [1], [0], [0], [0, 0, 1, 0], [], []>} : vector<8x8xbf16>, vector<8x8xbf16>, vector<8x8xf32> -> vector<8x8xf32>
    %cst_67 = arith.constant dense<0xFF800000> : vector<8xf32>
    %98 = vector.multi_reduction <maximumf>, %97, %cst_67 [1] : vector<8x8xf32> to vector<8xf32>
    %99 = vector.shape_cast %98 : vector<8xf32> to vector<8x1xf32>
    %100 = vector.broadcast %99 : vector<8x1xf32> to vector<8x8xf32>
    %101 = arith.subf %97, %100 : vector<8x8xf32>
    %102 = math.exp %101 : vector<8x8xf32>
    %cst_68 = arith.constant dense<0.000000e+00> : vector<8xf32>
    %103 = vector.multi_reduction <add>, %102, %cst_68 [1] : vector<8x8xf32> to vector<8xf32>
    %104 = vector.shape_cast %103 : vector<8xf32> to vector<8x1xf32>
    %105 = tpu.reciprocal %104 {approx = true} : vector<8x1xf32> -> vector<8x1xf32>
    %106 = vector.broadcast %105 : vector<8x1xf32> to vector<8x8xf32>
    %107 = arith.mulf %102, %106 : vector<8x8xf32>
    %108 = arith.truncf %107 : vector<8x8xf32> to vector<8x8xbf16>
    %cst_69 = arith.constant dense<0.000000e+00> : vector<8x8xf32>
    %109 = tpu.matmul %108, %96, %cst_69 {dimension_numbers = #tpu.dot_dimension_numbers<[1], [0], [0], [1], [0, 0, 1, 1], [], []>} : vector<8x8xbf16>, vector<8x8xbf16>, vector<8x8xf32> -> vector<8x8xf32>
    %110 = arith.truncf %109 : vector<8x8xf32> to vector<8x8xbf16>
    %c0_70 = arith.constant 0 : index
    %c16 = arith.constant 16 : index
    %111 = vector.load %arg20[%c0_70, %c16] : memref<8x32xbf16, #tpu.memory_space<vmem>>, vector<8x8xbf16>
    tpu.vector_store %arg20[%c0_70, %c16], %110 {strides = array<i32>} : memref<8x32xbf16, #tpu.memory_space<vmem>>, vector<8x8xbf16>,
    %c0_71 = arith.constant 0 : index
    %c3 = arith.constant 3 : index
    %c0_72 = arith.constant 0 : index
    %c0_73 = arith.constant 0 : index
    %112 = vector.load %arg5[%c0_71, %c3, %c0_72, %c0_73] : memref<1x4x32x8xbf16, #tpu.memory_space<vmem>>, vector<1x1x32x8xbf16>
    %113 = vector.shape_cast %112 : vector<1x1x32x8xbf16> to vector<32x8xbf16>
    %cst_74 = arith.constant dense<0.000000e+00> : vector<8x8xf32>
    %114 = tpu.matmul %30, %113, %cst_74 {dimension_numbers = #tpu.dot_dimension_numbers<[1], [0], [0], [1], [0, 0, 1, 1], [], []>} : vector<8x32xbf16>, vector<32x8xbf16>, vector<8x8xf32> -> vector<8x8xf32>
    %115 = arith.truncf %114 : vector<8x8xf32> to vector<8x8xbf16>
    %c0_75 = arith.constant 0 : index
    %c3_76 = arith.constant 3 : index
    %c0_77 = arith.constant 0 : index
    %c0_78 = arith.constant 0 : index
    %116 = vector.load %arg6[%c0_75, %c3_76, %c0_77, %c0_78] : memref<1x4x32x8xbf16, #tpu.memory_space<vmem>>, vector<1x1x32x8xbf16>
    %117 = vector.shape_cast %116 : vector<1x1x32x8xbf16> to vector<32x8xbf16>
    %cst_79 = arith.constant dense<0.000000e+00> : vector<8x8xf32>
    %118 = tpu.matmul %30, %117, %cst_79 {dimension_numbers = #tpu.dot_dimension_numbers<[1], [0], [0], [1], [0, 0, 1, 1], [], []>} : vector<8x32xbf16>, vector<32x8xbf16>, vector<8x8xf32> -> vector<8x8xf32>
    %119 = arith.truncf %118 : vector<8x8xf32> to vector<8x8xbf16>
    %c0_80 = arith.constant 0 : index
    %c3_81 = arith.constant 3 : index
    %c0_82 = arith.constant 0 : index
    %c0_83 = arith.constant 0 : index
    %120 = vector.load %arg7[%c0_80, %c3_81, %c0_82, %c0_83] : memref<1x4x32x8xbf16, #tpu.memory_space<vmem>>, vector<1x1x32x8xbf16>
    %121 = vector.shape_cast %120 : vector<1x1x32x8xbf16> to vector<32x8xbf16>
    %cst_84 = arith.constant dense<0.000000e+00> : vector<8x8xf32>
    %122 = tpu.matmul %30, %121, %cst_84 {dimension_numbers = #tpu.dot_dimension_numbers<[1], [0], [0], [1], [0, 0, 1, 1], [], []>} : vector<8x32xbf16>, vector<32x8xbf16>, vector<8x8xf32> -> vector<8x8xf32>
    %123 = arith.truncf %122 : vector<8x8xf32> to vector<8x8xbf16>
    %cst_85 = arith.constant dense<0.000000e+00> : vector<8x8xf32>
    %124 = tpu.matmul %115, %119, %cst_85 {dimension_numbers = #tpu.dot_dimension_numbers<[1], [1], [0], [0], [0, 0, 1, 0], [], []>} : vector<8x8xbf16>, vector<8x8xbf16>, vector<8x8xf32> -> vector<8x8xf32>
    %cst_86 = arith.constant dense<0xFF800000> : vector<8xf32>
    %125 = vector.multi_reduction <maximumf>, %124, %cst_86 [1] : vector<8x8xf32> to vector<8xf32>
    %126 = vector.shape_cast %125 : vector<8xf32> to vector<8x1xf32>
    %127 = vector.broadcast %126 : vector<8x1xf32> to vector<8x8xf32>
    %128 = arith.subf %124, %127 : vector<8x8xf32>
    %129 = math.exp %128 : vector<8x8xf32>
    %cst_87 = arith.constant dense<0.000000e+00> : vector<8xf32>
    %130 = vector.multi_reduction <add>, %129, %cst_87 [1] : vector<8x8xf32> to vector<8xf32>
    %131 = vector.shape_cast %130 : vector<8xf32> to vector<8x1xf32>
    %132 = tpu.reciprocal %131 {approx = true} : vector<8x1xf32> -> vector<8x1xf32>
    %133 = vector.broadcast %132 : vector<8x1xf32> to vector<8x8xf32>
    %134 = arith.mulf %129, %133 : vector<8x8xf32>
    %135 = arith.truncf %134 : vector<8x8xf32> to vector<8x8xbf16>
    %cst_88 = arith.constant dense<0.000000e+00> : vector<8x8xf32>
    %136 = tpu.matmul %135, %123, %cst_88 {dimension_numbers = #tpu.dot_dimension_numbers<[1], [0], [0], [1], [0, 0, 1, 1], [], []>} : vector<8x8xbf16>, vector<8x8xbf16>, vector<8x8xf32> -> vector<8x8xf32>
    %137 = arith.truncf %136 : vector<8x8xf32> to vector<8x8xbf16>
    %c0_89 = arith.constant 0 : index
    %c24 = arith.constant 24 : index
    %138 = vector.load %arg20[%c0_89, %c24] : memref<8x32xbf16, #tpu.memory_space<vmem>>, vector<8x8xbf16>
    tpu.vector_store %arg20[%c0_89, %c24], %137 {strides = array<i32>} : memref<8x32xbf16, #tpu.memory_space<vmem>>, vector<8x8xbf16>,
    %c0_90 = arith.constant 0 : index
    %c0_91 = arith.constant 0 : index
    %139 = vector.load %arg20[%c0_90, %c0_91] : memref<8x32xbf16, #tpu.memory_space<vmem>>, vector<8x32xbf16>
    %c0_92 = arith.constant 0 : index
    %c0_93 = arith.constant 0 : index
    %c0_94 = arith.constant 0 : index
    %140 = vector.load %arg8[%c0_92, %c0_93, %c0_94] : memref<1x32x32xbf16, #tpu.memory_space<vmem>>, vector<1x32x32xbf16>
    %141 = vector.shape_cast %140 : vector<1x32x32xbf16> to vector<32x32xbf16>
    %cst_95 = arith.constant dense<0.000000e+00> : vector<8x32xf32>
    %142 = tpu.matmul %139, %141, %cst_95 {dimension_numbers = #tpu.dot_dimension_numbers<[1], [0], [0], [1], [0, 0, 1, 1], [], []>} : vector<8x32xbf16>, vector<32x32xbf16>, vector<8x32xf32> -> vector<8x32xf32>
    %143 = arith.addf %3, %142 : vector<8x32xf32>
    %c0_96 = arith.constant 0 : index
    %c0_97 = arith.constant 0 : index
    %c0_98 = arith.constant 0 : index
    %144 = vector.load %arg9[%c0_96, %c0_97, %c0_98] : memref<1x1x32xf32, #tpu.memory_space<vmem>>, vector<1x1x32xf32>
    %145 = vector.shape_cast %144 : vector<1x1x32xf32> to vector<1x32xf32>
    %146 = vector.broadcast %145 : vector<1x32xf32> to vector<8x32xf32>
    %147 = arith.addf %143, %146 : vector<8x32xf32>
    %c0_99 = arith.constant 0 : index
    %c0_100 = arith.constant 0 : index
    %c0_101 = arith.constant 0 : index
    %148 = vector.load %arg10[%c0_99, %c0_100, %c0_101] : memref<1x1x32xf32, #tpu.memory_space<vmem>>, vector<1x1x32xf32>
    %149 = vector.shape_cast %148 : vector<1x1x32xf32> to vector<1x32xf32>
    %c0_102 = arith.constant 0 : index
    %c0_103 = arith.constant 0 : index
    %c0_104 = arith.constant 0 : index
    %150 = vector.load %arg11[%c0_102, %c0_103, %c0_104] : memref<1x1x32xf32, #tpu.memory_space<vmem>>, vector<1x1x32xf32>
    %151 = vector.shape_cast %150 : vector<1x1x32xf32> to vector<1x32xf32>
    %cst_105 = arith.constant dense<0.000000e+00> : vector<8xf32>
    %152 = vector.multi_reduction <add>, %147, %cst_105 [1] : vector<8x32xf32> to vector<8xf32>
    %153 = vector.shape_cast %152 : vector<8xf32> to vector<8x1xf32>
    %cst_106 = arith.constant 3.200000e+01 : f32
    %154 = vector.broadcast %cst_106 : f32 to vector<8x1xf32>
    %155 = arith.divf %153, %154 : vector<8x1xf32>
    %156 = vector.broadcast %155 : vector<8x1xf32> to vector<8x32xf32>
    %157 = arith.subf %147, %156 : vector<8x32xf32>
    %158 = arith.mulf %157, %157 : vector<8x32xf32>
    %cst_107 = arith.constant dense<0.000000e+00> : vector<8xf32>
    %159 = vector.multi_reduction <add>, %158, %cst_107 [1] : vector<8x32xf32> to vector<8xf32>
    %160 = vector.shape_cast %159 : vector<8xf32> to vector<8x1xf32>
    %cst_108 = arith.constant 3.200000e+01 : f32
    %161 = vector.broadcast %cst_108 : f32 to vector<8x1xf32>
    %162 = arith.divf %160, %161 : vector<8x1xf32>
    %163 = vector.broadcast %155 : vector<8x1xf32> to vector<8x32xf32>
    %164 = arith.subf %147, %163 : vector<8x32xf32>
    %cst_109 = arith.constant 9.99999974E-6 : f32
    %165 = vector.broadcast %cst_109 : f32 to vector<8x1xf32>
    %166 = arith.addf %162, %165 : vector<8x1xf32>
    %167 = math.rsqrt %166 : vector<8x1xf32>
    %168 = vector.broadcast %167 : vector<8x1xf32> to vector<8x32xf32>
    %169 = arith.mulf %164, %168 : vector<8x32xf32>
    %170 = vector.broadcast %149 : vector<1x32xf32> to vector<8x32xf32>
    %171 = arith.mulf %169, %170 : vector<8x32xf32>
    %172 = vector.broadcast %151 : vector<1x32xf32> to vector<8x32xf32>
    %173 = arith.addf %171, %172 : vector<8x32xf32>
    %174 = arith.truncf %173 : vector<8x32xf32> to vector<8x32xbf16>
    %c0_110 = arith.constant 0 : index
    %c0_111 = arith.constant 0 : index
    %c0_112 = arith.constant 0 : index
    %175 = vector.load %arg12[%c0_110, %c0_111, %c0_112] : memref<1x32x64xbf16, #tpu.memory_space<vmem>>, vector<1x32x64xbf16>
    %176 = vector.shape_cast %175 : vector<1x32x64xbf16> to vector<32x64xbf16>
    %cst_113 = arith.constant dense<0.000000e+00> : vector<8x64xf32>
    %177 = tpu.matmul %174, %176, %cst_113 {dimension_numbers = #tpu.dot_dimension_numbers<[1], [0], [0], [1], [0, 0, 1, 1], [], []>} : vector<8x32xbf16>, vector<32x64xbf16>, vector<8x64xf32> -> vector<8x64xf32>
    %c0_114 = arith.constant 0 : index
    %c0_115 = arith.constant 0 : index
    %c0_116 = arith.constant 0 : index
    %178 = vector.load %arg13[%c0_114, %c0_115, %c0_116] : memref<1x1x64xf32, #tpu.memory_space<vmem>>, vector<1x1x64xf32>
    %179 = vector.shape_cast %178 : vector<1x1x64xf32> to vector<1x64xf32>
    %180 = vector.broadcast %179 : vector<1x64xf32> to vector<8x64xf32>
    %181 = arith.addf %177, %180 : vector<8x64xf32>
    %cst_117 = arith.constant 5.000000e-01 : f32
    %182 = vector.broadcast %cst_117 : f32 to vector<8x64xf32>
    %183 = arith.mulf %182, %181 : vector<8x64xf32>
    %cst_118 = arith.constant 0.707106769 : f32
    %184 = vector.broadcast %cst_118 : f32 to vector<8x64xf32>
    %185 = arith.mulf %181, %184 : vector<8x64xf32>
    %186 = math.erf %185 : vector<8x64xf32>
    %cst_119 = arith.constant 1.000000e+00 : f32
    %187 = vector.broadcast %cst_119 : f32 to vector<8x64xf32>
    %188 = arith.addf %187, %186 : vector<8x64xf32>
    %189 = arith.mulf %183, %188 : vector<8x64xf32>
    %190 = arith.truncf %189 : vector<8x64xf32> to vector<8x64xbf16>
    %c0_120 = arith.constant 0 : index
    %c0_121 = arith.constant 0 : index
    %c0_122 = arith.constant 0 : index
    %191 = vector.load %arg14[%c0_120, %c0_121, %c0_122] : memref<1x64x32xbf16, #tpu.memory_space<vmem>>, vector<1x64x32xbf16>
    %192 = vector.shape_cast %191 : vector<1x64x32xbf16> to vector<64x32xbf16>
    %cst_123 = arith.constant dense<0.000000e+00> : vector<8x32xf32>
    %193 = tpu.matmul %190, %192, %cst_123 {dimension_numbers = #tpu.dot_dimension_numbers<[1], [0], [0], [1], [0, 0, 1, 1], [], []>} : vector<8x64xbf16>, vector<64x32xbf16>, vector<8x32xf32> -> vector<8x32xf32>
    %c0_124 = arith.constant 0 : index
    %c0_125 = arith.constant 0 : index
    %c0_126 = arith.constant 0 : index
    %194 = vector.load %arg15[%c0_124, %c0_125, %c0_126] : memref<1x1x32xf32, #tpu.memory_space<vmem>>, vector<1x1x32xf32>
    %195 = vector.shape_cast %194 : vector<1x1x32xf32> to vector<1x32xf32>
    %196 = vector.broadcast %195 : vector<1x32xf32> to vector<8x32xf32>
    %197 = arith.addf %193, %196 : vector<8x32xf32>
    %198 = arith.addf %147, %197 : vector<8x32xf32>
    %c0_127 = arith.constant 0 : index
    %c0_128 = arith.constant 0 : index
    %199 = vector.load %arg19[%c0_127, %c0_128] : memref<8x32xf32, #tpu.memory_space<vmem>>, vector<8x32xf32>
    tpu.vector_store %arg19[%c0_127, %c0_128], %198 {strides = array<i32>} : memref<8x32xf32, #tpu.memory_space<vmem>>, vector<8x32xf32>,
    %c1_i32 = arith.constant 1 : i32
    %200 = arith.cmpi eq, %arg1, %c1_i32 : i32
    %201 = arith.extui %200 : i1 to i32
    %c0_i32_129 = arith.constant 0 : i32
    %202 = arith.cmpi ne, %201, %c0_i32_129 : i32
    scf.if %202 {
      %c0_130 = arith.constant 0 : index
      %c0_131 = arith.constant 0 : index
      %203 = vector.load %arg16[%c0_130, %c0_131] : memref<1x32xf32, #tpu.memory_space<vmem>>, vector<1x32xf32>
      %c0_132 = arith.constant 0 : index
      %c0_133 = arith.constant 0 : index
      %204 = vector.load %arg17[%c0_132, %c0_133] : memref<1x32xf32, #tpu.memory_space<vmem>>, vector<1x32xf32>
      %cst_134 = arith.constant dense<0.000000e+00> : vector<8xf32>
      %205 = vector.multi_reduction <add>, %198, %cst_134 [1] : vector<8x32xf32> to vector<8xf32>
      %206 = vector.shape_cast %205 : vector<8xf32> to vector<8x1xf32>
      %cst_135 = arith.constant 3.200000e+01 : f32
      %207 = vector.broadcast %cst_135 : f32 to vector<8x1xf32>
      %208 = arith.divf %206, %207 : vector<8x1xf32>
      %209 = vector.broadcast %208 : vector<8x1xf32> to vector<8x32xf32>
      %210 = arith.subf %198, %209 : vector<8x32xf32>
      %211 = arith.mulf %210, %210 : vector<8x32xf32>
      %cst_136 = arith.constant dense<0.000000e+00> : vector<8xf32>
      %212 = vector.multi_reduction <add>, %211, %cst_136 [1] : vector<8x32xf32> to vector<8xf32>
      %213 = vector.shape_cast %212 : vector<8xf32> to vector<8x1xf32>
      %cst_137 = arith.constant 3.200000e+01 : f32
      %214 = vector.broadcast %cst_137 : f32 to vector<8x1xf32>
      %215 = arith.divf %213, %214 : vector<8x1xf32>
      %216 = vector.broadcast %208 : vector<8x1xf32> to vector<8x32xf32>
      %217 = arith.subf %198, %216 : vector<8x32xf32>
      %cst_138 = arith.constant 9.99999974E-6 : f32
      %218 = vector.broadcast %cst_138 : f32 to vector<8x1xf32>
      %219 = arith.addf %215, %218 : vector<8x1xf32>
      %220 = math.rsqrt %219 : vector<8x1xf32>
      %221 = vector.broadcast %220 : vector<8x1xf32> to vector<8x32xf32>
      %222 = arith.mulf %217, %221 : vector<8x32xf32>
      %223 = vector.broadcast %203 : vector<1x32xf32> to vector<8x32xf32>
      %224 = arith.mulf %222, %223 : vector<8x32xf32>
      %225 = vector.broadcast %204 : vector<1x32xf32> to vector<8x32xf32>
      %226 = arith.addf %224, %225 : vector<8x32xf32>
      %c0_139 = arith.constant 0 : index
      %c0_140 = arith.constant 0 : index
      %227 = vector.load %arg18[%c0_139, %c0_140] : memref<8x32xf32, #tpu.memory_space<vmem>>, vector<8x32xf32>
      tpu.vector_store %arg18[%c0_139, %c0_140], %226 {strides = array<i32>} : memref<8x32xf32, #tpu.memory_space<vmem>>, vector<8x32xf32>,
    } else {
    }
    return
  }
  func.func @transform_0(%arg0: i32, %arg1: i32) -> (i32, i32) {
    %c0_i32 = arith.constant 0 : i32
    %c0_i32_0 = arith.constant 0 : i32
    return %arg0, %c0_i32 : i32, i32
  }
  func.func @transform_1(%arg0: i32, %arg1: i32) -> (i32, i32, i32) {
    %c0_i32 = arith.constant 0 : i32
    %c0_i32_0 = arith.constant 0 : i32
    %c0_i32_1 = arith.constant 0 : i32
    return %arg1, %c0_i32, %c0_i32_0 : i32, i32, i32
  }
  func.func @transform_2(%arg0: i32, %arg1: i32) -> (i32, i32, i32) {
    %c0_i32 = arith.constant 0 : i32
    %c0_i32_0 = arith.constant 0 : i32
    %c0_i32_1 = arith.constant 0 : i32
    return %arg1, %c0_i32, %c0_i32_0 : i32, i32, i32
  }
  func.func @transform_3(%arg0: i32, %arg1: i32) -> (i32, i32, i32, i32) {
    %c0_i32 = arith.constant 0 : i32
    %c0_i32_0 = arith.constant 0 : i32
    %c0_i32_1 = arith.constant 0 : i32
    %c0_i32_2 = arith.constant 0 : i32
    return %arg1, %c0_i32, %c0_i32_0, %c0_i32_1 : i32, i32, i32, i32
  }
  func.func @transform_4(%arg0: i32, %arg1: i32) -> (i32, i32, i32, i32) {
    %c0_i32 = arith.constant 0 : i32
    %c0_i32_0 = arith.constant 0 : i32
    %c0_i32_1 = arith.constant 0 : i32
    %c0_i32_2 = arith.constant 0 : i32
    return %arg1, %c0_i32, %c0_i32_0, %c0_i32_1 : i32, i32, i32, i32
  }
  func.func @transform_5(%arg0: i32, %arg1: i32) -> (i32, i32, i32, i32) {
    %c0_i32 = arith.constant 0 : i32
    %c0_i32_0 = arith.constant 0 : i32
    %c0_i32_1 = arith.constant 0 : i32
    %c0_i32_2 = arith.constant 0 : i32
    return %arg1, %c0_i32, %c0_i32_0, %c0_i32_1 : i32, i32, i32, i32
  }
  func.func @transform_6(%arg0: i32, %arg1: i32) -> (i32, i32, i32) {
    %c0_i32 = arith.constant 0 : i32
    %c0_i32_0 = arith.constant 0 : i32
    %c0_i32_1 = arith.constant 0 : i32
    return %arg1, %c0_i32, %c0_i32_0 : i32, i32, i32
  }
  func.func @transform_7(%arg0: i32, %arg1: i32) -> (i32, i32, i32) {
    %c0_i32 = arith.constant 0 : i32
    %c0_i32_0 = arith.constant 0 : i32
    %c0_i32_1 = arith.constant 0 : i32
    return %arg1, %c0_i32, %c0_i32_0 : i32, i32, i32
  }
  func.func @transform_8(%arg0: i32, %arg1: i32) -> (i32, i32, i32) {
    %c0_i32 = arith.constant 0 : i32
    %c0_i32_0 = arith.constant 0 : i32
    %c0_i32_1 = arith.constant 0 : i32
    return %arg1, %c0_i32, %c0_i32_0 : i32, i32, i32
  }
  func.func @transform_9(%arg0: i32, %arg1: i32) -> (i32, i32, i32) {
    %c0_i32 = arith.constant 0 : i32
    %c0_i32_0 = arith.constant 0 : i32
    %c0_i32_1 = arith.constant 0 : i32
    return %arg1, %c0_i32, %c0_i32_0 : i32, i32, i32
  }
  func.func @transform_10(%arg0: i32, %arg1: i32) -> (i32, i32, i32) {
    %c0_i32 = arith.constant 0 : i32
    %c0_i32_0 = arith.constant 0 : i32
    %c0_i32_1 = arith.constant 0 : i32
    return %arg1, %c0_i32, %c0_i32_0 : i32, i32, i32
  }
  func.func @transform_11(%arg0: i32, %arg1: i32) -> (i32, i32, i32) {
    %c0_i32 = arith.constant 0 : i32
    %c0_i32_0 = arith.constant 0 : i32
    %c0_i32_1 = arith.constant 0 : i32
    return %arg1, %c0_i32, %c0_i32_0 : i32, i32, i32
  }
  func.func @transform_12(%arg0: i32, %arg1: i32) -> (i32, i32, i32) {
    %c0_i32 = arith.constant 0 : i32
    %c0_i32_0 = arith.constant 0 : i32
    %c0_i32_1 = arith.constant 0 : i32
    return %arg1, %c0_i32, %c0_i32_0 : i32, i32, i32
  }
  func.func @transform_13(%arg0: i32, %arg1: i32) -> (i32, i32, i32) {
    %c0_i32 = arith.constant 0 : i32
    %c0_i32_0 = arith.constant 0 : i32
    %c0_i32_1 = arith.constant 0 : i32
    return %arg1, %c0_i32, %c0_i32_0 : i32, i32, i32
  }
  func.func @transform_14(%arg0: i32, %arg1: i32) -> (i32, i32) {
    %c0_i32 = arith.constant 0 : i32
    %c0_i32_0 = arith.constant 0 : i32
    %c0_i32_1 = arith.constant 0 : i32
    return %c0_i32, %c0_i32_0 : i32, i32
  }
  func.func @transform_15(%arg0: i32, %arg1: i32) -> (i32, i32) {
    %c0_i32 = arith.constant 0 : i32
    %c0_i32_0 = arith.constant 0 : i32
    %c0_i32_1 = arith.constant 0 : i32
    return %c0_i32, %c0_i32_0 : i32, i32
  }
  func.func @transform_16(%arg0: i32, %arg1: i32) -> (i32, i32) {
    %c0_i32 = arith.constant 0 : i32
    %c0_i32_0 = arith.constant 0 : i32
    return %arg0, %c0_i32 : i32, i32
  }
}

</mosaic_0001>

<bundles_post_ra>
// kernel: tpu_custom_call.1
= control target key start
LH: loop header
LB: loop body
LE: loop exit
PB: predicated region body
PF: predicated region fallthrough
CT: control target
= control target key end

     0   :  { %s3564_s0 = inlined_call_operand.vmem [shape: f32[16,32], index: 0, kind: input, shape index: {}]   ;;  %s3565_s1 = inlined_call_operand.vmem [shape: f32[2,1,32], index: 1, kind: input, shape index: {}]   ;;  %s3566_s2 = inlined_call_operand.vmem [shape: f32[2,1,32], index: 2, kind: input, shape index: {}]   ;;  %s3567_s3 = inlined_call_operand.vmem [shape: bf16[2,4,32,8], index: 3, kind: input, shape index: {}]   ;;  %s3568_s4 = inlined_call_operand.vmem [shape: bf16[2,4,32,8], index: 4, kind: input, shape index: {}]   ;;  %s3569_s5 = inlined_call_operand.vmem [shape: bf16[2,4,32,8], index: 5, kind: input, shape index: {}]   ;;  %s3570_s6 = inlined_call_operand.vmem [shape: bf16[2,32,32], index: 6, kind: input, shape index: {}]   ;;  %s3571_s7 = inlined_call_operand.vmem [shape: f32[2,1,32], index: 7, kind: input, shape index: {}]   ;;  %s3572_s8 = inlined_call_operand.vmem [shape: f32[2,1,32], index: 8, kind: input, shape index: {}]   ;;  %s3573_s9 = inlined_call_operand.vmem [shape: f32[2,1,32], index: 9, kind: input, shape index: {}]   ;;  %s3574_s10 = inlined_call_operand.vmem [shape: bf16[2,32,64], index: 10, kind: input, shape index: {}]   ;;  %s3575_s11 = inlined_call_operand.vmem [shape: f32[2,1,64], index: 11, kind: input, shape index: {}]   ;;  %s3576_s12 = inlined_call_operand.vmem [shape: bf16[2,64,32], index: 12, kind: input, shape index: {}]   ;;  %s3577_s13 = inlined_call_operand.vmem [shape: f32[2,1,32], index: 13, kind: input, shape index: {}]   ;;  %s3578_s14 = inlined_call_operand.vmem [shape: f32[1,32], index: 14, kind: input, shape index: {}]   ;;  %s3579_s15 = inlined_call_operand.vmem [shape: f32[1,32], index: 15, kind: input, shape index: {}]   ;;  %s3580_s16 = inlined_call_operand.hbm [shape: f32[16,32], index: 16, kind: output, shape index: {}]  }
   0x1   :  { %3597 = sst [smem:[#allocation21_spill]] %s3564_s0 }
   0x2   :  { %3598 = sst [smem:[#allocation22_spill]] %s3567_s3 }
   0x3   :  { %3599 = sst [smem:[#allocation23_spill]] %s3568_s4 }
   0x4   :  { %3600 = sst [smem:[#allocation24_spill]] %s3569_s5 }
   0x5   :  { %3601 = sst [smem:[#allocation25_spill]] %s3570_s6 }
   0x6   :  { %3602 = sst [smem:[#allocation26_spill]] %s3572_s8 }
   0x7   :  { %3603 = sst [smem:[#allocation27_spill]] %s3576_s12 }
   0x8   :  { %3604 = sst [smem:[#allocation28_spill]] %s3578_s14 }
   0x9   :  { %3605 = sst [smem:[#allocation29_spill]] %s3579_s15 }
   0xa   :  { %3606 = sst [smem:[#allocation30_spill]] %s3580_s16 }
   0xb   :  { %21 = vsyncpa [#allocation5], 0 }
   0xc   :  { %23 = vsyncpa [#allocation5 + $0x1], 0  ;;  %s3132_s21 = smov 0   ;;  %s3134_s22 = smov 0  }
   0xd   :  { %s3136_s23 = smov 0   ;;  %s3138_s24 = smov 0  }
   0xe   :  { %s3140_s25 = smov 0   ;;  %s3142_s26 = smov 0  }
   0xf   :  { %s3144_s27 = smov 0   ;;  %s3146_s28 = smov 0  }
  0x10 LB: > { %3607 = sst [smem:[#allocation7_spill]] %s3011_s21  ;;  %s2441_s29 = sadd.s32 4294967295, %s3039_s28   ;;  %s3039_s28 = sphi %s3146_s28, %s29_s28   ;;  %s3035_s27 = sphi %s3144_s27, %s3655_s27   ;;  %s3031_s26 = sphi %s3142_s26, %s3654_s26   ;;  %s3027_s25 = sphi %s3140_s25, %s3653_s25   ;;  %s3023_s24 = sphi %s3138_s24, %s3652_s24   ;;  %s3019_s23 = sphi %s3136_s23, %s3651_s23   ;;  %s3015_s22 = sphi %s3134_s22, %s3650_s22   ;;  %s3011_s21 = sphi %s3132_s21, %s3649_s21  }
  0x11   : > { %3608 = sst [smem:[#allocation8_spill]] %s3015_s22  ;;  %s2442_s30 = sadd.s32 4294967294, %s3039_s28  }
  0x12   : > { %3609 = sst [smem:[#allocation9_spill]] %s3019_s23  ;;  %s38_s0 = sadd.s32 1, %s3031_s26 }
  0x13   : > { %3610 = sst [smem:[#allocation10_spill]] %s3023_s24  ;;  %p39_p0 = scmp.ge.s32.totalorder %s38_s0, 2 }
  0x14   : > { %3611 = sst [smem:[#allocation11_spill]] %s3027_s25  ;;  %s41_s17 = sadd.s32 1, %s3035_s27 }
  0x15   : > { %3612 = sst [smem:[#allocation12_spill]] %s3031_s26  ;;  %p464_p1 = scmp.ne.s32.totalorder %s3019_s23, %s3015_s22 }
  0x16   : > { %3613 = sst [smem:[#allocation13_spill]] %s3035_s27  ;;  %p465_p2 = scmp.eq.s32.totalorder %s2441_s29, 3 }
  0x17   : > { %3614 = sst [smem:[#allocation14_spill]] %s3039_s28  ;;  %s3657_s0 = smov (%p39_p0, %s38_s0), 0 }
  0x18   : > { %3615 = sst [smem:[#allocation15_spill]] %s3657_s0  ;;  %s3659_s17 = smov (!%p39_p0, %s41_s17), %s3035_s27 }
  0x19   : > { %p3181_p3 = por %p465_p2, %p464_p1  ;;  %p470_p4 = scmp.ne.s32.totalorder %s3015_s22, %s3011_s21 }
  0x1a   : > { %p43_p5 = scmp.ge.s32.totalorder %s3659_s17, 2  ;;  %p471_p6 = scmp.eq.s32.totalorder %s2442_s30, 3 }
  0x1b   : > { %s3616_s18 = scalar_select %p3181_p3, 1, 0 }
  0x1c   : > { %p2445_p7 = scmp.ge.s32.totalorder %s3039_s28, 1  ;;  %p592_p8 = scmp.lt.s32.totalorder %s3039_s28, 5 }
  0x1d   : > { %3617 = sst [smem:[#allocation16_spill]] %s3616_s18  ;;  %s3661_s17 = smov (%p43_p5, %s3659_s17), 0 }
  0x1e   : > { %3618 = sst [smem:[#allocation17_spill]] %s3661_s17  ;;  %p3191_p9 = por %p471_p6, %p470_p4 }
  0x1f   : > { %p593_p10 = pnand %p2445_p7, %p592_p8  ;;  %s451_s20 = ssub.s32 %s3035_s27, %s3661_s17 }
  0x20   : > { %s3619_s19 = scalar_select %p3191_p9, 1, 0 }
  0x21   : > { %s454_s29 = sadd.s32 1, %s3019_s23  ;;  %p452_p11 = scmp.eq.s32.totalorder %s451_s20, 0 }
  0x22   : > { %3620 = sst [smem:[#allocation18_spill]] %s3619_s19  ;;  %596 = sbr.rel (%p593_p10) target bundleno = 5071 (0x13cf), region = 84 }
  0x23   : > { %s3199_s0 = scalar_select %p452_p11, %s3019_s23, %s454_s29  }
  0x25   : > { %3621 = sst [smem:[#allocation19_spill]] %s3199_s0 }
  0x29   : > { %s3586_s30 = sand.u32 1, %s3015_s22   ;;  %p692_p12 = scmp.lt.s32.totalorder %s3027_s25, 1 }
  0x2a   : > { %s3205_s26 = sshll.u32 %s3586_s30, 3  ;;  %p696_p13 = scmp.lt.s32.totalorder %s3023_s24, 1 }
  0x2b   : > { %s693_s19 = scalar_select %p692_p12, %s3027_s25, 1 }
  0x2c   : > { %s3210_s21 = scalar_select %p696_p13, %s3023_s24, 1 }
  0x2d   : > { %s2447_s20 = sshll.u32 %s693_s19, 3  ;;  %s3622_s27 = sld [smem:[#allocation21_spill]] }
  0x2e   : > { %s2569_s25 = sshll.u32 %s3210_s21, 6  ;;  %s3623_s3 = sld [smem:[#allocation22_spill]] }
  0x2f   : > { %s3624_s4 = sld [smem:[#allocation23_spill]]  ;;  %s3625_s5 = sld [smem:[#allocation24_spill]] }
  0x30   : > { %s2572_s0 = sshll.u32 %s3210_s21, 4  ;;  %s3626_s6 = sld [smem:[#allocation25_spill]] }
  0x31   : > { %s746_s15 = scalar_lea.vmem %s3577_s13, %s3210_s21  ;;  %s3629_s12 = sld [smem:[#allocation27_spill]] }
  0x32   : > { %s3630_s19 = sld [smem:[#allocation10_spill]] }
  0x33   : > { %s695_s30 = scalar_lea.vmem %s3622_s27, %s2447_s20  ;;  %s730_s27 = scalar_lea.vmem %s3573_s9, %s3210_s21 }
  0x34   : > { %s3227_s24 = scalar_lea.vmem %s3623_s3, %s2569_s25 }
  0x35   : > { %s3232_s17 = scalar_lea.vmem %s3624_s4, %s2569_s25  ;;  %s3237_s23 = scalar_lea.vmem %s3625_s5, %s2569_s25 }
  0x36   : > { %s3243_s29 = scalar_lea.vmem %s3626_s6, %s2572_s0  ;;  %s3260_s5 = scalar_lea.vmem %s3574_s10, %s2572_s0 }
  0x37   : > { %3627 = sst [smem:[#allocation20_spill]] %s3243_s29  ;;  %s738_s6 = scalar_lea.vmem %s3575_s11, %s3210_s21 }
  0x38   : > { %s2574_s29 = sshll.u32 %s3210_s21, 5  ;;  %s691_s4 = scalar_lea.vmem [#allocation4], %s3205_s26 }
  0x39   : > { %s3274_s8 = scalar_lea.vmem %s3629_s12, %s2574_s29  ;;  %p2460_p0 = scmp.ne.s32.totalorder %s3630_s19, 0 }
  0x3a   : > { %v752_v0 = vld [vmem:[%s695_s30] sm:$0xff] (!%p2460_p0)  ;;  %vm753_vm0 = vcmask (!%p2460_p0), 261120  }
  0x3b   : > { %751 = sbr.rel (%p2460_p0) target bundleno = 66 (0x42), region = 88  ;;  %754 = vst.msk [vmem:[#allocation2] sm:$0xff] (!%p2460_p0), %vm753_vm0, %v752_v0 }
  0x42 PF: > { %v3278_v1 = vld [vmem:[#allocation2] sm:$0xff]  ;;  %vm758_vm1 = vcmask 261120   ;;  %v3041_v10 = vmov 0.0   ;;  %v2891_v11 = vld [vmem:[%s3227_s24 + $0x8] sm:$0xff]   ;;  %vm3042_vm2 = vmmov 0   ;;  %s3631_s29 = scalar_lea.vmem %s3565_s1, %s3210_s21  ;;  %s3632_s20 = scalar_lea.vmem %s3566_s2, %s3210_s21  ;;  %vm1024_vm3 = vcmask 1043456  }
  0x43   : > { %v759_v2 = vsel %vm758_vm1, %v3278_v1, 0.0  ;;  %v2889_v8 = vld [vmem:[%s3227_s24] sm:$0xff]   ;;  %2641 = vmatprep.subr.bf16.mxu1 %v3041_v10  ;;  %2657 = vmatprep.subr.bf16.mxu0 %v3041_v10  ;;  %v2892_v12 = vld [vmem:[%s3237_s23 + $0x8] sm:$0xff]   ;;  %vm962_vm4 = vcmask 64512   ;;  %v2895_v41 = vld [vmem:[%s3227_s24 + $0x10] sm:$0xff]   ;;  %vm1069_vm5 = vcmask 60416   ;;  %s3634_s14 = scalar_lea.vmem %s3571_s7, %s3210_s21 }
  0x44   : > { %760 = vadd.xlane.f32.xlu0 %v759_v2  ;;  %v2890_v9 = vld [vmem:[%s3237_s23] sm:$0xff]   ;;  %2642 = vmatpush3.bf16.msra.mxu1 %v2889_v8  ;;  %v2894_v24 = vld [vmem:[%s3232_s17 + $0x8] sm:$0xff]   ;;  %v2896_v43 = vld [vmem:[%s3227_s24 + $0x18] sm:$0xff]   ;;  %vm1356_vm6 = vcmask 126016   ;;  %vm1643_vm7 = vcmask 191616   ;;  %s3045_s16 = smov 24  }
  0x45   : > { %2658 = vmatpush3.bf16.msra.mxu0 %v2890_v9  ;;  %2643 = vmatprep.subr.bf16.mxu1 %v3041_v10  ;;  %v2461_v17 = vld [vmem:[%s3631_s29] ss:$0 sm:$0xff]  ;;  %v2897_v44 = vld [vmem:[%s3237_s23 + $0x10] sm:$0xff]   ;;  %v2898_v45 = vld [vmem:[%s3237_s23 + $0x18] sm:$0xff]   ;;  %vm1930_vm8 = vcmask 257216   ;;  %s3635_s19 = sld [smem:[#allocation26_spill]] }
  0x46   : > { %2659 = vmatprep.subr.bf16.mxu0 %v3041_v10  ;;  %2645 = vmatprep.mubr.msk.bf16.mxu1 %vm3042_vm2, %v3041_v10  ;;  %v2462_v19 = vld [vmem:[%s3632_s20] ss:$0 sm:$0xff]  ;;  %v2900_v8 = vld [vmem:[%s3232_s17 + $0x18] sm:$0xff]   ;;  %vm2142_vm9 = vcmask 523264  }
  0x47   : > { %2661 = vmatprep.mubr.msk.bf16.mxu0 %vm3042_vm2, %v3041_v10  ;;  %v2893_v22 = vld [vmem:[%s3232_s17] sm:$0xff]  }
  0x48   : > { %2644 = vmatpush3.bf16.msra.mxu1 %v2891_v11 }
  0x49   : > { %2660 = vmatpush3.bf16.msra.mxu0 %v2892_v12  ;;  %2649 = vmatprep.subr.bf16.mxu1 %v3041_v10 }
  0x4a   : > { %2671 = vmatprep.subr.bf16.mxu0 %v3041_v10 }
  0x4b   : > { %s3636_s30 = scalar_lea.vmem %s3635_s19, %s3210_s21 }
  0xd1   : > { %v761_v3 = vpop.xlane.xlu0 %760 }
  0xd2   : > { %v763_v4 = vmul.f32 0.03125, %v761_v3 }
  0xd4   : > { %v764_v5 = vsub.f32 %v3278_v1, %v763_v4 }
  0xd6   : > { %v765_v6 = vmul.f32 %v764_v5, %v764_v5 }
  0xd8   : > { %v766_v7 = vsel %vm758_vm1, %v765_v6, 0.0  ;;  %v2899_v6 = vld [vmem:[%s3232_s17 + $0x10] sm:$0xff]  }
  0xd9   : > { %767 = vadd.xlane.f32.xlu0 %v766_v7 }
 0x166   : > { %v768_v13 = vpop.xlane.xlu0 %767 }
 0x167   : > { %v769_v14 = vmul.f32 0.03125, %v768_v13 }
 0x169   : > { %v770_v15 = vadd.f32 1e-05, %v769_v14 }
 0x16b   : > { %2921 = vrsqrt.f32 %v770_v15 }
 0x175   : > { %v2922_v16 = vpop.eup %2921 }
 0x176   : > { %v772_v18 = vmul.f32 %v2922_v16, %v764_v5 }
 0x178   : > { %v779_v20 = vmul.f32 %v2461_v17, %v772_v18 }
 0x17a   : > { %v786_v21 = vadd.f32 %v2462_v19, %v779_v20 }
 0x17c   : > { %v3309_v23 = vpack.c.bf16 %v786_v21, %v786_v21  ;;  %v2901_v21 = vld [vmem:[%s3227_s24 + $0x20] sm:$0xff]  }
 0x17e   : > { %2646 = vmatmul.mubr.msk.bf16.vlgmr.msra.gmra.mrb[0].mxu1 %vm758_vm1, %v3309_v23  ;;  %2662 = vmatmul.mubr.msk.bf16.vlgmr.msra.gmra.mrb[0].mxu0 %vm758_vm1, %v3309_v23 }
 0x17f   : > { %2650 = vmatpush3.bf16.msra.mxu1 %v2893_v22  ;;  %2653 = vmatprep.mubr.msk.bf16.mxu1 %vm3042_vm2, %v3041_v10 }
 0x180   : > { %2651 = vmatprep.subr.bf16.mxu1 %v3041_v10  ;;  %2673 = vmatprep.mubr.msk.bf16.mxu0 %vm3042_vm2, %v3041_v10 }
 0x183   : > { %2652 = vmatpush3.bf16.msra.mxu1 %v2894_v24  ;;  %v2902_v24 = vld [vmem:[%s3227_s24 + $0x28] sm:$0xff]  }
 0x184   : > { %2665 = vmatprep.subr.bf16.mxu1 %v3041_v10 }
 0x186   : > { %2654 = vmatmul.mubr.msk.bf16.vlgmr.msra.gmra.mrb[4].mxu1 %vm758_vm1, %v3309_v23 }
 0x187   : > { %2667 = vmatprep.mubr.msk.bf16.mxu1 %vm3042_vm2, %v3041_v10 }
 0x251   : > { %v841_v25 = vpop.f32.mrb[0].mxu1  ;;  %v955_v26 = vpop.f32.mrb[0].mxu0 }
 0x252   : > { %v961_v27 = vpack.c.bf16 %v955_v26, %v955_v26  ;;  %v2647_v28 = vpop.f32.mrb[1].mxu1  ;;  %v2663_v29 = vpop.f32.mrb[1].mxu0  ;;  %v847_v42 = vpack.c.bf16 %v841_v25, %v841_v25  ;;  %v2903_v25 = vld [vmem:[%s3237_s23 + $0x20] sm:$0xff]   ;;  %v2904_v26 = vld [vmem:[%s3237_s23 + $0x28] sm:$0xff]  }
 0x253   : > { %v844_v30 = vpop.f32.mrb[2].mxu1  ;;  %v958_v31 = vpop.f32.mrb[2].mxu0 }
 0x254   : > { %v1026_v32 = vsel %vm1024_vm3, %v961_v27, 0  ;;  %v2648_v33 = vpop.f32.mrb[3].mxu1  ;;  %v2664_v34 = vpop.f32.mrb[3].mxu0 }
 0x255   : > { %2672 = vmatpush3.bf16.msra.mxu0 %v1026_v32 }
 0x256   : > { %2685 = vmatprep.subr.bf16.mxu0 %v3041_v10 }
 0x259   : > { %v898_v35 = vpop.f32.mrb[4].mxu1 }
 0x25a   : > { %v904_v36 = vpack.c.bf16 %v898_v35, %v898_v35  ;;  %v2655_v37 = vpop.f32.mrb[5].mxu1 }
 0x25b   : > { %v901_v38 = vpop.f32.mrb[6].mxu1 }
 0x25c   : > { %v967_v39 = vsel %vm962_vm4, %v904_v36, 0  ;;  %v2656_v40 = vpop.f32.mrb[7].mxu1 }
 0x25d   : > { %2666 = vmatpush3.bf16.xpose.msra.mxu1 %v967_v39 }
 0x25e   : > { %2677 = vmatprep.subr.bf16.mxu1 %v3041_v10 }
 0x264   : > { %2668 = vmatmul.mubr.msk.bf16.vlgmr.msra.gmra.mrb[8].mxu1 %vm962_vm4, %v847_v42 }
 0x265   : > { %2678 = vmatpush3.bf16.msra.mxu1 %v2895_v41  ;;  %2681 = vmatprep.mubr.msk.bf16.mxu1 %vm3042_vm2, %v3041_v10 }
 0x266   : > { %2679 = vmatprep.subr.bf16.mxu1 %v3041_v10 }
 0x269   : > { %2680 = vmatpush3.bf16.msra.mxu1 %v2896_v43 }
 0x26a   : > { %2693 = vmatprep.subr.bf16.mxu1 %v3041_v10 }
 0x26c   : > { %2682 = vmatmul.mubr.msk.bf16.vlgmr.msra.gmra.mrb[12].mxu1 %vm758_vm1, %v3309_v23 }
 0x26d   : > { %2694 = vmatpush3.bf16.msra.mxu1 %v2897_v44  ;;  %2697 = vmatprep.mubr.msk.bf16.mxu1 %vm3042_vm2, %v3041_v10 }
 0x26e   : > { %2695 = vmatprep.subr.bf16.mxu1 %v3041_v10 }
 0x271   : > { %2696 = vmatpush3.bf16.msra.mxu1 %v2898_v45 }
 0x272   : > { %2707 = vmatprep.subr.bf16.mxu1 %v3041_v10 }
 0x274   : > { %2698 = vmatmul.mubr.msk.bf16.vlgmr.msra.gmra.mrb[16].mxu1 %vm758_vm1, %v3309_v23 }
 0x275   : > { %2709 = vmatprep.mubr.msk.bf16.mxu1 %vm3042_vm2, %v3041_v10 }
 0x337   : > { %v1003_v46 = vpop.f32.mrb[8].mxu1 }
 0x338   : > { %v2669_v47 = vpop.f32.mrb[9].mxu1  ;;  %v1009_v48 = vsel %vm962_vm4, %v1003_v46, -inf }
 0x339   : > { %1010 = vmax.xlane.f32.xlu1 %v1009_v48  ;;  %v1006_v49 = vpop.f32.mrb[10].mxu1 }
 0x33a   : > { %v2670_v50 = vpop.f32.mrb[11].mxu1 }
 0x33b   : > { %v2905_v50 = vld [vmem:[%s3232_s17 + $0x20] sm:$0xff]  }
 0x33f   : > { %v1122_v51 = vpop.f32.mrb[12].mxu1 }
 0x340   : > { %v2683_v52 = vpop.f32.mrb[13].mxu1  ;;  %v1128_v22 = vpack.c.bf16 %v1122_v51, %v1122_v51 }
 0x341   : > { %v1125_v53 = vpop.f32.mrb[14].mxu1  ;;  %v2906_v52 = vld [vmem:[%s3232_s17 + $0x28] sm:$0xff]  }
 0x342   : > { %v2684_v54 = vpop.f32.mrb[15].mxu1 }
 0x347   : > { %v1238_v55 = vpop.f32.mrb[16].mxu1 }
 0x348   : > { %v1244_v56 = vpack.c.bf16 %v1238_v55, %v1238_v55  ;;  %v2699_v57 = vpop.f32.mrb[17].mxu1 }
 0x349   : > { %v1241_v58 = vpop.f32.mrb[18].mxu1 }
 0x34a   : > { %v1307_v59 = vsel %vm1024_vm3, %v1244_v56, 0  ;;  %v2700_v60 = vpop.f32.mrb[19].mxu1 }
 0x34b   : > { %2708 = vmatpush3.bf16.msra.mxu1 %v1307_v59 }
 0x34c   : > { %2721 = vmatprep.subr.bf16.mxu1 %v3041_v10 }
 0x3c6   : > { %v1011_v61 = vpop.xlane.xlu1 %1010 }
 0x3c7   : > { %v1012_v62 = vsub.f32 %v1003_v46, %v1011_v61 }
 0x3c9   : > { %v1013_v63 = vmul.f32 1.442695, %v1012_v62 }
 0x3cb   : > { %2923 = vpow2.f32 %v1013_v63  ;;  %v2907_v63 = vld [vmem:[%s3227_s24 + $0x30] sm:$0xff]  }
 0x3d5   : > { %v2924_v0 = vpop.eup %2923 }
 0x3d6   : > { %v1015_v2 = vsel %vm962_vm4, %v2924_v0, 0.0 }
 0x3d7   : > { %1016 = vadd.xlane.f32.xlu1 %v1015_v2  ;;  %v2908_v2 = vld [vmem:[%s3227_s24 + $0x38] sm:$0xff]   ;;  %s3043_s24 = smov 8  }
 0x464   : > { %v1017_v3 = vpop.xlane.xlu1 %1016 }
 0x465   : > { %2925 = vrcp.f32 %v1017_v3  ;;  %v2909_v3 = vld [vmem:[%s3237_s23 + $0x30] sm:$0xff]  }
 0x46f   : > { %v2926_v4 = vpop.eup %2925 }
 0x470   : > { %v1019_v5 = vmul.f32 %v2926_v4, %v2924_v0  ;;  %v2910_v4 = vld [vmem:[%s3237_s23 + $0x38] sm:$0xff]   ;;  %s3044_s23 = smov 16  }
 0x472   : > { %v1020_v7 = vpack.c.bf16 %v1019_v5, %v1019_v5 }
 0x474   : > { %2674 = vmatmul.mubr.msk.bf16.vlgmr.msra.gmra.mrb[4].mxu0 %vm962_vm4, %v1020_v7 }
 0x475   : > { %2686 = vmatpush3.bf16.msra.mxu0 %v2899_v6  ;;  %2689 = vmatprep.mubr.msk.bf16.mxu0 %vm3042_vm2, %v3041_v10 }
 0x476   : > { %2687 = vmatprep.subr.bf16.mxu0 %v3041_v10 }
 0x479   : > { %2688 = vmatpush3.bf16.msra.mxu0 %v2900_v8 }
 0x47a   : > { %2701 = vmatprep.subr.bf16.mxu0 %v3041_v10 }
 0x47c   : > { %2690 = vmatmul.mubr.msk.bf16.vlgmr.msra.gmra.mrb[8].mxu0 %vm758_vm1, %v3309_v23 }
 0x47d   : > { %2703 = vmatprep.mubr.msk.bf16.mxu0 %vm3042_vm2, %v3041_v10 }
 0x547   : > { %v1062_v9 = vpop.f32.mrb[4].mxu0 }
 0x548   : > { %v1068_v11 = vpack.c.bf16 %v1062_v9, %v1062_v9  ;;  %v2675_v12 = vpop.f32.mrb[5].mxu0 }
 0x549   : > { %v1065_v13 = vpop.f32.mrb[6].mxu0 }
 0x54a   : > { %1070 = vst.msk [vmem:[#allocation3] sm:$0xf] %vm1069_vm5, %v1068_v11  ;;  %v2676_v14 = vpop.f32.mrb[7].mxu0 }
 0x54f   : > { %v1180_v15 = vpop.f32.mrb[8].mxu0 }
 0x550   : > { %v1186_v16 = vpack.c.bf16 %v1180_v15, %v1180_v15  ;;  %v2691_v17 = vpop.f32.mrb[9].mxu0 }
 0x551   : > { %v1183_v18 = vpop.f32.mrb[10].mxu0 }
 0x552   : > { %v1249_v19 = vsel %vm962_vm4, %v1186_v16, 0  ;;  %v2692_v20 = vpop.f32.mrb[11].mxu0 }
 0x553   : > { %2702 = vmatpush3.bf16.xpose.msra.mxu0 %v1249_v19 }
 0x554   : > { %2713 = vmatprep.subr.bf16.mxu0 %v3041_v10 }
 0x55a   : > { %2704 = vmatmul.mubr.msk.bf16.vlgmr.msra.gmra.mrb[12].mxu0 %vm962_vm4, %v1128_v22 }
 0x55b   : > { %2714 = vmatpush3.bf16.msra.mxu0 %v2901_v21  ;;  %2717 = vmatprep.mubr.msk.bf16.mxu0 %vm3042_vm2, %v3041_v10 }
 0x55c   : > { %2715 = vmatprep.subr.bf16.mxu0 %v3041_v10 }
 0x55f   : > { %2716 = vmatpush3.bf16.msra.mxu0 %v2902_v24 }
 0x560   : > { %2729 = vmatprep.subr.bf16.mxu0 %v3041_v10 }
 0x562   : > { %2718 = vmatmul.mubr.msk.bf16.vlgmr.msra.gmra.mrb[16].mxu0 %vm758_vm1, %v3309_v23 }
 0x563   : > { %2730 = vmatpush3.bf16.msra.mxu0 %v2903_v25  ;;  %2733 = vmatprep.mubr.msk.bf16.mxu0 %vm3042_vm2, %v3041_v10 }
 0x564   : > { %2731 = vmatprep.subr.bf16.mxu0 %v3041_v10 }
 0x567   : > { %2732 = vmatpush3.bf16.msra.mxu0 %v2904_v26 }
 0x568   : > { %2743 = vmatprep.subr.bf16.mxu0 %v3041_v10 }
 0x56a   : > { %2734 = vmatmul.mubr.msk.bf16.vlgmr.msra.gmra.mrb[20].mxu0 %vm758_vm1, %v3309_v23 }
 0x56b   : > { %2745 = vmatprep.mubr.msk.bf16.mxu0 %vm3042_vm2, %v3041_v10 }
 0x62d   : > { %v1285_v27 = vpop.f32.mrb[12].mxu0 }
 0x62e   : > { %v2705_v28 = vpop.f32.mrb[13].mxu0  ;;  %v1291_v29 = vsel %vm962_vm4, %v1285_v27, -inf }
 0x62f   : > { %1292 = vmax.xlane.f32.xlu0 %v1291_v29  ;;  %v1288_v30 = vpop.f32.mrb[14].mxu0 }
 0x630   : > { %v2706_v31 = vpop.f32.mrb[15].mxu0  ;;  %v2911_v30 = vld [vmem:[%s3232_s17 + $0x30] sm:$0xff]  }
 0x635   : > { %v1409_v32 = vpop.f32.mrb[16].mxu0 }
 0x636   : > { %v2719_v33 = vpop.f32.mrb[17].mxu0  ;;  %v1415_v0 = vpack.c.bf16 %v1409_v32, %v1409_v32  ;;  %v2912_v32 = vld [vmem:[%s3232_s17 + $0x38] sm:$0xff]   ;;  %s3633_s17 = sld [smem:[#allocation20_spill]] }
 0x637   : > { %v1412_v34 = vpop.f32.mrb[18].mxu0 }
 0x638   : > { %v2720_v35 = vpop.f32.mrb[19].mxu0 }
 0x63d   : > { %v1525_v36 = vpop.f32.mrb[20].mxu0 }
 0x63e   : > { %v1531_v37 = vpack.c.bf16 %v1525_v36, %v1525_v36  ;;  %v2735_v38 = vpop.f32.mrb[21].mxu0 }
 0x63f   : > { %v1528_v39 = vpop.f32.mrb[22].mxu0 }
 0x640   : > { %v1594_v40 = vsel %vm1024_vm3, %v1531_v37, 0  ;;  %v2736_v41 = vpop.f32.mrb[23].mxu0 }
 0x641   : > { %2744 = vmatpush3.bf16.msra.mxu0 %v1594_v40 }
 0x642   : > { %2757 = vmatprep.subr.bf16.mxu0 %v3041_v10 }
 0x6bc   : > { %v1293_v42 = vpop.xlane.xlu0 %1292 }
 0x6bd   : > { %v1294_v43 = vsub.f32 %v1285_v27, %v1293_v42 }
 0x6bf   : > { %v1295_v44 = vmul.f32 1.442695, %v1294_v43 }
 0x6c1   : > { %2927 = vpow2.f32 %v1295_v44 }
 0x6cb   : > { %v2928_v45 = vpop.eup %2927 }
 0x6cc   : > { %v1297_v46 = vsel %vm962_vm4, %v2928_v45, 0.0 }
 0x6cd   : > { %1298 = vadd.xlane.f32.xlu1 %v1297_v46 }
 0x75a   : > { %v1299_v47 = vpop.xlane.xlu1 %1298 }
 0x75b   : > { %2929 = vrcp.f32 %v1299_v47 }
 0x765   : > { %v2930_v48 = vpop.eup %2929 }
 0x766   : > { %v1301_v49 = vmul.f32 %v2930_v48, %v2928_v45 }
 0x768   : > { %v1302_v51 = vpack.c.bf16 %v1301_v49, %v1301_v49 }
 0x76a   : > { %2710 = vmatmul.mubr.msk.bf16.vlgmr.msra.gmra.mrb[20].mxu1 %vm962_vm4, %v1302_v51 }
 0x76b   : > { %2722 = vmatpush3.bf16.msra.mxu1 %v2905_v50  ;;  %2725 = vmatprep.mubr.msk.bf16.mxu1 %vm3042_vm2, %v3041_v10 }
 0x76c   : > { %2723 = vmatprep.subr.bf16.mxu1 %v3041_v10 }
 0x76f   : > { %2724 = vmatpush3.bf16.msra.mxu1 %v2906_v52 }
 0x770   : > { %2737 = vmatprep.subr.bf16.mxu1 %v3041_v10 }
 0x772   : > { %2726 = vmatmul.mubr.msk.bf16.vlgmr.msra.gmra.mrb[24].mxu1 %vm758_vm1, %v3309_v23 }
 0x773   : > { %2739 = vmatprep.mubr.msk.bf16.mxu1 %vm3042_vm2, %v3041_v10 }
 0x83d   : > { %v3400_v53 = vpop.f32.mrb[20].mxu1 }
 0x83e   : > { %v2711_v54 = vpop.f32.mrb[21].mxu1  ;;  %v2575_v48 = vpack.c.bf16 %v3400_v53, %v3400_v53 }
 0x83f   : > { %v1346_v55 = vpop.f32.mrb[22].mxu1 }
 0x840   : > { %v2712_v56 = vpop.f32.mrb[23].mxu1 }
 0x845   : > { %v1467_v57 = vpop.f32.mrb[24].mxu1 }
 0x846   : > { %v1473_v58 = vpack.c.bf16 %v1467_v57, %v1467_v57  ;;  %v2727_v59 = vpop.f32.mrb[25].mxu1 }
 0x847   : > { %v1470_v60 = vpop.f32.mrb[26].mxu1 }
 0x848   : > { %v1536_v61 = vsel %vm962_vm4, %v1473_v58, 0  ;;  %v2728_v62 = vpop.f32.mrb[27].mxu1 }
 0x849   : > { %2738 = vmatpush3.bf16.xpose.msra.mxu1 %v1536_v61  ;;  %v2913_v61 = vld [vmem:[%s3633_s17] sm:$0xff]   ;;  %v2914_v62 = vld [vmem:[%s3633_s17 + $0x8] sm:$0xff]  }
 0x84a   : > { %2749 = vmatprep.subr.bf16.mxu1 %v3041_v10 }
 0x850   : > { %2740 = vmatmul.mubr.msk.bf16.vlgmr.msra.gmra.mrb[28].mxu1 %vm962_vm4, %v1415_v0 }
 0x851   : > { %2750 = vmatpush3.bf16.msra.mxu1 %v2907_v63  ;;  %2753 = vmatprep.mubr.msk.bf16.mxu1 %vm3042_vm2, %v3041_v10 }
 0x852   : > { %2751 = vmatprep.subr.bf16.mxu1 %v3041_v10 }
 0x855   : > { %2752 = vmatpush3.bf16.msra.mxu1 %v2908_v2 }
 0x856   : > { %2765 = vmatprep.subr.bf16.mxu1 %v3041_v10 }
 0x858   : > { %2754 = vmatmul.mubr.msk.bf16.vlgmr.msra.gmra.mrb[32].mxu1 %vm758_vm1, %v3309_v23 }
 0x859   : > { %2766 = vmatpush3.bf16.msra.mxu1 %v2909_v3  ;;  %2769 = vmatprep.mubr.msk.bf16.mxu1 %vm3042_vm2, %v3041_v10 }
 0x85a   : > { %2767 = vmatprep.subr.bf16.mxu1 %v3041_v10 }
 0x85d   : > { %2768 = vmatpush3.bf16.msra.mxu1 %v2910_v4 }
 0x85e   : > { %2779 = vmatprep.subr.bf16.mxu1 %v3041_v10 }
 0x860   : > { %2770 = vmatmul.mubr.msk.bf16.vlgmr.msra.gmra.mrb[36].mxu1 %vm758_vm1, %v3309_v23 }
 0x861   : > { %2781 = vmatprep.mubr.msk.bf16.mxu1 %vm3042_vm2, %v3041_v10 }
 0x923   : > { %v1572_v5 = vpop.f32.mrb[28].mxu1 }
 0x924   : > { %v2741_v6 = vpop.f32.mrb[29].mxu1  ;;  %v1578_v7 = vsel %vm962_vm4, %v1572_v5, -inf }
 0x925   : > { %1579 = vmax.xlane.f32.xlu0 %v1578_v7  ;;  %v1575_v8 = vpop.f32.mrb[30].mxu1 }
 0x926   : > { %v2742_v9 = vpop.f32.mrb[31].mxu1  ;;  %v2549_v8 = vld [vmem:[%s3634_s14] ss:$0 sm:$0xff] }
 0x92b   : > { %v1696_v11 = vpop.f32.mrb[32].mxu1 }
 0x92c   : > { %v2755_v12 = vpop.f32.mrb[33].mxu1  ;;  %v1702_v43 = vpack.c.bf16 %v1696_v11, %v1696_v11 }
 0x92d   : > { %v1699_v13 = vpop.f32.mrb[34].mxu1 }
 0x92e   : > { %v2756_v14 = vpop.f32.mrb[35].mxu1 }
 0x933   : > { %v1812_v15 = vpop.f32.mrb[36].mxu1 }
 0x934   : > { %v1818_v16 = vpack.c.bf16 %v1812_v15, %v1812_v15  ;;  %v2771_v17 = vpop.f32.mrb[37].mxu1 }
 0x935   : > { %v1815_v18 = vpop.f32.mrb[38].mxu1 }
 0x936   : > { %v1881_v19 = vsel %vm1024_vm3, %v1818_v16, 0  ;;  %v2772_v20 = vpop.f32.mrb[39].mxu1 }
 0x937   : > { %2780 = vmatpush3.bf16.msra.mxu1 %v1881_v19 }
 0x938   : > { %2793 = vmatprep.subr.bf16.mxu1 %v3041_v10 }
 0x9b2   : > { %v1580_v21 = vpop.xlane.xlu0 %1579 }
 0x9b3   : > { %v1581_v22 = vsub.f32 %v1572_v5, %v1580_v21  ;;  %v2915_v21 = vld [vmem:[%s3260_s5] sm:$0xff]  }
 0x9b5   : > { %v1582_v24 = vmul.f32 1.442695, %v1581_v22 }
 0x9b7   : > { %2931 = vpow2.f32 %v1582_v24 }
 0x9c1   : > { %v2932_v25 = vpop.eup %2931 }
 0x9c2   : > { %v1584_v26 = vsel %vm962_vm4, %v2932_v25, 0.0 }
 0x9c3   : > { %1585 = vadd.xlane.f32.xlu1 %v1584_v26 }
 0xa50   : > { %v1586_v27 = vpop.xlane.xlu1 %1585 }
 0xa51   : > { %2933 = vrcp.f32 %v1586_v27  ;;  %v2550_v27 = vld [vmem:[%s3636_s30] ss:$0 sm:$0xff] }
 0xa5b   : > { %v2934_v28 = vpop.eup %2933 }
 0xa5c   : > { %v1588_v29 = vmul.f32 %v2934_v28, %v2932_v25 }
 0xa5e   : > { %v1589_v31 = vpack.c.bf16 %v1588_v29, %v1588_v29  ;;  %v2551_v29 = vld [vmem:[%s730_s27] ss:$0 sm:$0xff] }
 0xa60   : > { %2746 = vmatmul.mubr.msk.bf16.vlgmr.msra.gmra.mrb[24].mxu0 %vm962_vm4, %v1589_v31 }
 0xa61   : > { %2758 = vmatpush3.bf16.msra.mxu0 %v2911_v30  ;;  %2761 = vmatprep.mubr.msk.bf16.mxu0 %vm3042_vm2, %v3041_v10 }
 0xa62   : > { %2759 = vmatprep.subr.bf16.mxu0 %v3041_v10 }
 0xa65   : > { %2760 = vmatpush3.bf16.msra.mxu0 %v2912_v32 }
 0xa66   : > { %2773 = vmatprep.subr.bf16.mxu0 %v3041_v10 }
 0xa68   : > { %2762 = vmatmul.mubr.msk.bf16.vlgmr.msra.gmra.mrb[28].mxu0 %vm758_vm1, %v3309_v23 }
 0xa69   : > { %2775 = vmatprep.mubr.msk.bf16.mxu0 %vm3042_vm2, %v3041_v10 }
 0xb33   : > { %v1630_v33 = vpop.f32.mrb[24].mxu0 }
 0xb34   : > { %v2747_v34 = vpop.f32.mrb[25].mxu0  ;;  %v2576_v56 = vpack.c.bf16 %v1630_v33, %v1630_v33  ;;  %v2917_v33 = vld [vmem:[%s3274_s8] sm:$0xff]  }
 0xb35   : > { %v1633_v35 = vpop.f32.mrb[26].mxu0  ;;  %v2918_v34 = vld [vmem:[%s3274_s8 + $0x8] sm:$0xff]  }
 0xb36   : > { %v2748_v36 = vpop.f32.mrb[27].mxu0  ;;  %v2919_v35 = vld [vmem:[%s3274_s8 + $0x10] sm:$0xff]  }
 0xb37   : > { %v2920_v36 = vld [vmem:[%s3274_s8 + $0x18] sm:$0xff]  }
 0xb3b   : > { %v1754_v37 = vpop.f32.mrb[28].mxu0 }
 0xb3c   : > { %v1760_v38 = vpack.c.bf16 %v1754_v37, %v1754_v37  ;;  %v2763_v39 = vpop.f32.mrb[29].mxu0  ;;  %v2552_v37 = vld [vmem:[%s738_s6] ss:$0 sm:$0xff]  ;;  %s3637_s6 = sld [smem:[#allocation10_spill]] }
 0xb3d   : > { %v1757_v40 = vpop.f32.mrb[30].mxu0 }
 0xb3e   : > { %v1823_v41 = vsel %vm962_vm4, %v1760_v38, 0  ;;  %v2764_v42 = vpop.f32.mrb[31].mxu0 }
 0xb3f   : > { %2774 = vmatpush3.bf16.xpose.msra.mxu0 %v1823_v41 }
 0xb40   : > { %2785 = vmatprep.subr.bf16.mxu0 %v3041_v10 }
 0xb42   : > { %p2562_p1 = scmp.ne.s32.totalorder %s3637_s6, 1 }
 0xb43   : > { %s3638_s25 = sld [smem:[#allocation28_spill]] (!%p2562_p1)  ;;  %s3639_s17 = sld [smem:[#allocation29_spill]] (!%p2562_p1) }
 0xb46   : > { %2776 = vmatmul.mubr.msk.bf16.vlgmr.msra.gmra.mrb[32].mxu0 %vm962_vm4, %v1702_v43 }
 0xb47   : > { %2789 = vmatprep.mubr.msk.bf16.mxu0 %vm3042_vm2, %v3041_v10  ;;  %2786 = vmatpush3.bf16.msra.mxu0 %v2913_v61 }
 0xb48   : > { %2787 = vmatprep.subr.bf16.mxu0 %v3041_v10 }
 0xb4b   : > { %2788 = vmatpush3.bf16.msra.mxu0 %v2914_v62 }
 0xb4c   : > { %2801 = vmatprep.subr.bf16.mxu0 %v3041_v10 }
 0xc19   : > { %v1859_v23 = vpop.f32.mrb[32].mxu0 }
 0xc1a   : > { %v2777_v44 = vpop.f32.mrb[33].mxu0  ;;  %v1865_v45 = vsel %vm962_vm4, %v1859_v23, -inf }
 0xc1b   : > { %1866 = vmax.xlane.f32.xlu0 %v1865_v45  ;;  %v1862_v46 = vpop.f32.mrb[34].mxu0 }
 0xc1c   : > { %v2778_v47 = vpop.f32.mrb[35].mxu0 }
 0xc1d   : > { %v2556_v47 = vld [vmem:[%s746_s15] ss:$0 sm:$0xff] }
 0xc31   : > { %1353 = vrot.lane.b32.xlu0 %v2575_v48, %s3043_s24 }
 0xca8   : > { %v1867_v49 = vpop.xlane.xlu0 %1866 }
 0xca9   : > { %v1868_v50 = vsub.f32 %v1859_v23, %v1867_v49 }
 0xcab   : > { %v1869_v51 = vmul.f32 1.442695, %v1868_v50 }
 0xcac   : > { %v1354_v52 = vpop.permute.xlu0 %1353 }
 0xcad   : > { %2935 = vpow2.f32 %v1869_v51  ;;  %1357 = vst.msk [vmem:[#allocation3] sm:$0xf] %vm1356_vm6, %v1354_v52 }
 0xcb7   : > { %v2936_v54 = vpop.eup %2935 }
 0xcb8   : > { %v1871_v55 = vsel %vm962_vm4, %v2936_v54, 0.0 }
 0xcb9   : > { %1872 = vadd.xlane.f32.xlu1 %v1871_v55 }
 0xcca   : > { %1640 = vrot.lane.b32.xlu1 %v2576_v56, %s3044_s23 }
 0xd46   : > { %v1873_v57 = vpop.xlane.xlu1 %1872 }
 0xd47   : > { %2937 = vrcp.f32 %v1873_v57 }
 0xd4a   : > { %v1641_v53 = vpop.permute.xlu1 %1640 }
 0xd4b   : > { %1644 = vst.msk [vmem:[#allocation3] sm:$0xf] %vm1643_vm7, %v1641_v53 }
 0xd51   : > { %v2938_v58 = vpop.eup %2937 }
 0xd52   : > { %v1875_v59 = vmul.f32 %v2938_v58, %v2936_v54 }
 0xd54   : > { %v1876_v60 = vpack.c.bf16 %v1875_v59, %v1875_v59 }
 0xd56   : > { %2782 = vmatmul.mubr.msk.bf16.vlgmr.msra.gmra.mrb[40].mxu1 %vm962_vm4, %v1876_v60 }
 0xd57   : > { %2797 = vmatprep.mubr.msk.bf16.mxu1 %vm3042_vm2, %v3041_v10  ;;  %2794 = vmatpush3.bf16.msra.mxu1 %v2915_v21 }
 0xd58   : > { %2795 = vmatprep.subr.bf16.mxu1 %v3041_v10 }
 0xe29   : > { %v1917_v63 = vpop.f32.mrb[40].mxu1 }
 0xe2a   : > { %v2577_v0 = vpack.c.bf16 %v1917_v63, %v1917_v63  ;;  %v2783_v2 = vpop.f32.mrb[41].mxu1 }
 0xe2b   : > { %v1920_v3 = vpop.f32.mrb[42].mxu1 }
 0xe2c   : > { %1927 = vrot.lane.b32.xlu1 %v2577_v0, %s3045_s16  ;;  %v2784_v4 = vpop.f32.mrb[43].mxu1  ;;  %v2563_v0 = vld [vmem:[%s3638_s25] ss:$0 sm:$0xff] (!%p2562_p1) }
 0xe2d   : > { %v2564_v3 = vld [vmem:[%s3639_s17] ss:$0 sm:$0xff] (!%p2562_p1) }
 0xe9e   : > { %v1928_v5 = vpop.permute.xlu1 %1927 }
 0xe9f   : > { %1931 = vst.msk [vmem:[#allocation3] sm:$0xf] %vm1930_vm8, %v1928_v5 }
 0xea6   : > { %v1932_v6 = vld [vmem:[#allocation3] sm:$0xf] }
 0xea7   : > { %2790 = vmatmul.mubr.msk.bf16.vlgmr.msra.gmra.mrb[36].mxu0 %vm758_vm1, %v1932_v6 }
 0xea8   : > { %2809 = vmatprep.mubr.msk.bf16.mxu0 %vm3042_vm2, %v3041_v10  ;;  %2802 = vmatpush3.bf16.msra.mxu0 %v2917_v33 }
 0xea9   : > { %2803 = vmatprep.subr.bf16.mxu0 %v3041_v10 }
 0xeac   : > { %2804 = vmatpush3.bf16.msra.mxu0 %v2918_v34 }
 0xead   : > { %2805 = vmatprep.subr.bf16.mxu0 %v3041_v10 }
 0xeb0   : > { %2806 = vmatpush3.bf16.msra.mxu0 %v2919_v35 }
 0xeb1   : > { %2807 = vmatprep.subr.bf16.mxu0 %v3041_v10 }
 0xeb4   : > { %2808 = vmatpush3.bf16.msra.mxu0 %v2920_v36 }
 0xf7a   : > { %v1986_v7 = vpop.f32.mrb[36].mxu0 }
 0xf7b   : > { %v1992_v9 = vadd.f32 %v1986_v7, %v3278_v1  ;;  %v2791_v11 = vpop.f32.mrb[37].mxu0  ;;  %v2916_v1 = vld [vmem:[%s3260_s5 + $0x8] sm:$0xff]  }
 0xf7c   : > { %v1989_v12 = vpop.f32.mrb[38].mxu0  ;;  %2796 = vmatpush3.bf16.msra.mxu1 %v2916_v1 }
 0xf7d   : > { %v2000_v13 = vadd.f32 %v2549_v8, %v1992_v9  ;;  %v2792_v14 = vpop.f32.mrb[39].mxu0 }
 0xf7f   : > { %v2003_v15 = vsel %vm758_vm1, %v2000_v13, 0.0 }
 0xf80   : > { %2004 = vadd.xlane.f32.xlu1 %v2003_v15 }
0x100d   : > { %v2005_v16 = vpop.xlane.xlu1 %2004 }
0x100e   : > { %v2006_v17 = vmul.f32 0.03125, %v2005_v16 }
0x1010   : > { %v2007_v18 = vsub.f32 %v2000_v13, %v2006_v17 }
0x1012   : > { %v2008_v19 = vmul.f32 %v2007_v18, %v2007_v18 }
0x1014   : > { %v2009_v20 = vsel %vm758_vm1, %v2008_v19, 0.0 }
0x1015   : > { %2010 = vadd.xlane.f32.xlu0 %v2009_v20 }
0x10a2   : > { %v2011_v22 = vpop.xlane.xlu0 %2010 }
0x10a3   : > { %v2012_v24 = vmul.f32 0.03125, %v2011_v22 }
0x10a5   : > { %v2013_v25 = vadd.f32 1e-05, %v2012_v24 }
0x10a7   : > { %2939 = vrsqrt.f32 %v2013_v25 }
0x10b1   : > { %v2940_v26 = vpop.eup %2939 }
0x10b2   : > { %v2015_v28 = vmul.f32 %v2940_v26, %v2007_v18 }
0x10b4   : > { %v2022_v30 = vmul.f32 %v2550_v27, %v2015_v28 }
0x10b6   : > { %v2029_v31 = vadd.f32 %v2551_v29, %v2022_v30 }
0x10b8   : > { %v2030_v32 = vpack.c.bf16 %v2029_v31, %v2029_v31 }
0x10ba   : > { %2798 = vmatmul.mubr.msk.bf16.vlgmr.msra.gmra.mrb[44].mxu1 %vm758_vm1, %v2030_v32 }
0x118d   : > { %v2091_v38 = vpop.f32.mrb[44].mxu1 }
0x118e   : > { %v2092_v39 = vadd.f32 %v2552_v37, %v2091_v38  ;;  %v2799_v40 = vpop.f32.mrb[45].mxu1 }
0x118f   : > { %v2094_v41 = vpop.f32.mrb[46].mxu1 }
0x1190   : > { %v2098_v42 = vmul.f32 0.70710677, %v2092_v39  ;;  %v2800_v43 = vpop.f32.mrb[47].mxu1  ;;  %v2097_v44 = vmul.f32 0.5, %v2092_v39 }
0x1192   : > { %2941 = verf.f32 %v2098_v42 }
0x119c   : > { %v2942_v23 = vpop.eup %2941 }
0x119d   : > { %v2100_v45 = vadd.f32 1.0, %v2942_v23 }
0x119f   : > { %v2101_v46 = vmul.f32 %v2100_v45, %v2097_v44 }
0x11a1   : > { %v2102_v10 = vpack.c.bf16 %v2101_v46, %v2101_v46 }
0x11a3   : > { %2810 = vmatmul.mubr.msk.bf16.vlgmr.msra.gmra.mrb[40].mxu0 %vm2142_vm9, %v2102_v10 }
0x1275   : > { %2191 = sbr.rel (%p2562_p1) target bundleno = 5045 (0x13b5), region = 92 }
0x1276   : > { %v2180_v48 = vpop.f32.mrb[40].mxu0 }
0x1277   : > { %v2181_v49 = vadd.f32 %v2556_v47, %v2180_v48  ;;  %v2811_v50 = vpop.f32.mrb[41].mxu0 }
0x1278   : > { %v2183_v51 = vpop.f32.mrb[42].mxu0 }
0x1279   : > { %v2186_v52 = vadd.f32 %v2181_v49, %v2000_v13  ;;  %v2812_v54 = vpop.f32.mrb[43].mxu0 }
0x127b   : > { %2187 = vst.msk [vmem:[#allocation2] sm:$0xff] %vm758_vm1, %v2186_v52  ;;  %v2194_v55 = vsel (!%p2562_p1), %vm758_vm1, %v2186_v52, 0.0 }
0x127c   : > { %2195 = vadd.xlane.f32.xlu0 %v2194_v55 }
0x1309   : > { %v2196_v56 = vpop.xlane.xlu0 %2195 }
0x130a   : > { %v2197_v57 = vmul.f32 0.03125, %v2196_v56 }
0x130c   : > { %v2198_v53 = vsub.f32 %v2186_v52, %v2197_v57 }
0x130e   : > { %v2199_v58 = vmul.f32 %v2198_v53, %v2198_v53 }
0x1310   : > { %v2200_v59 = vsel %vm758_vm1, %v2199_v58, 0.0 }
0x1311   : > { %2201 = vadd.xlane.f32.xlu0 %v2200_v59 }
0x139e   : > { %v2202_v60 = vpop.xlane.xlu0 %2201 }
0x139f   : > { %v2203_v61 = vmul.f32 0.03125, %v2202_v60 }
0x13a1   : > { %v2204_v62 = vadd.f32 1e-05, %v2203_v61 }
0x13a3   : > { %2943 = vrsqrt.f32 %v2204_v62 }
0x13ad   : > { %v2944_v63 = vpop.eup %2943 }
0x13ae   : > { %v2206_v2 = vmul.f32 %v2944_v63, %v2198_v53 }
0x13b0   : > { %v2213_v4 = vmul.f32 %v2563_v0, %v2206_v2 }
0x13b2   : > { %v2220_v5 = vadd.f32 %v2564_v3, %v2213_v4 }
0x13b4   : > { %2221 = vst.msk [vmem:[%s691_s4] sm:$0xff] %vm758_vm1, %v2220_v5 }
0x13b5 PF: > { %s3640_s23 = sld [smem:[#allocation11_spill]]  ;;  %s3641_s16 = sld [smem:[#allocation8_spill]] }
0x13b6   : > { %s3643_s28 = sld [smem:[#allocation30_spill]]  ;;  %s2236_s0 = sshll.u32 %s691_s4, 4  ;;  %s2237_s0 = int_to_ptr.vmem [resolvable:$true] %s2236_s0 }
0x13b7   : > { %s2945_s27 = scalar_lea.vmem %s2237_s0, 128  ;;  %s3046_s8 = smov [#allocation4]  }
0x13b8   : > { %p2946_p2 = scmp.ne.s32.totalorder %s2237_s0, %s2945_s27  ;;  %s2949_s12 = sshll.u32 %s3046_s8, 4  ;;  %s2950_s12 = int_to_ptr.vmem [resolvable:$false] %s2949_s12 }
0x13b9   : > { %s2951_s6 = scalar_lea.vmem %s2950_s12, 256  ;;  %p2952_p6 = scmp.lt.s32.totalorder %s2237_s0, %s2950_s12 }
0x13ba   : > { %p2947_p4 = pnand %p2946_p2, %p3181_p3  ;;  %p2953_p7 = scmp.lt.s32.totalorder %s2951_s6, %s2945_s27 }
0x13bb   : > { %s2566_s22 = sshll.u32 %s3640_s23, 7  ;;  %s3645_s29 = sand.u32 1, %s3641_s16  }
0x13bc   : > { %s3644_s19 = smov %s3643_s28  ;;  %s3513_s30 = scalar_lea.hbm %s3643_s28, %s2566_s22 }
0x13bd   : > { %s2223_s5 = scalar_lea.sflag [#allocation5], %s3645_s29  ;;  %p2948_p5 = pneg %p2947_p4 }
0x13be   : > { %p2954_p8 = por %p2953_p7, %p2952_p6 }
0x13c0   : > { %p2955_p10 = pnand %p2954_p8, %p2948_p5 }
0x13c2   : > { %2958 = shalt.err (!%p2955_p10)
}
0x13c3   : > { %s2959_s26 = scalar_lea.hbm %s3513_s30, 128  ;;  %s2963_s15 = scalar_lea.hbm %s3644_s19, 256 }
0x13c4   : > { %p2960_p11 = scmp.ne.s32.totalorder %s3513_s30, %s2959_s26  ;;  %p2964_p0 = scmp.lt.u32.totalorder %s3513_s30, %s3644_s19 }
0x13c5   : > { %p2965_p1 = scmp.lt.u32.totalorder %s2963_s15, %s2959_s26  ;;  %p2967_p4 = scmp.lt.u32.totalorder %s2959_s26, %s3513_s30 }
0x13c6   : > { %p2961_p12 = pnand %p2960_p11, %p3181_p3 }
0x13c7   : > { %p2966_p2 = por %p2965_p1, %p2964_p0 }
0x13c8   : > { %p2962_p13 = pneg %p2961_p12 }
0x13c9   : > { %p2968_p5 = por %p2967_p4, %p2966_p2 }
0x13cb   : > { %p2969_p6 = pnand %p2968_p5, %p2962_p13 }
0x13cd   : > { %2972 = shalt.err (!%p2969_p6)
}
0x13ce   : > { %2813 = dma.vmem_to_hbm [thread:$0]  (%p3181_p3), %s2237_s0, 128, %s3513_s30, %s2223_s5  }
0x13cf PF: > { %s3646_s24 = sld [smem:[#allocation14_spill]]  ;;  %s3647_s17 = sld [smem:[#allocation7_spill]] }
0x13d5   : > { %p2819_p7 = scmp.ge.s32.totalorder %s3646_s24, 2  ;;  %s2248_s16 = sand.u32 1, %s3647_s17  }
0x13d6   : > { %s2249_s22 = scalar_lea.sflag [#allocation5], %s2248_s16 }
0x13d7   : > { %p2816_p8 = pnand %p2819_p7, %p3191_p9 }
0x13d9   : > { %3006 = dma.done.wait (!%p2816_p8), %s2249_s22, 128  }
0x13da   : > { %3008 = vsyncadd (!%p2816_p8), %s2249_s22, 4294967168  ;;  %s29_s28 = sadd.s32 1, %s3646_s24   ;;  %s3649_s21 = sld [smem:[#allocation8_spill]] }
0x13db   : > { %p26_p10 = scmp.ge.s32.totalorder %s29_s28, 6   ;;  %s3650_s22 = sld [smem:[#allocation9_spill]] }
0x13dc   : > { %s3651_s23 = sld [smem:[#allocation19_spill]]  ;;  %s3652_s24 = sld [smem:[#allocation12_spill]] }
0x13dd   : > { %s3653_s25 = sld [smem:[#allocation13_spill]]  ;;  %s3654_s26 = sld [smem:[#allocation15_spill]] }
0x13de   : > { %s3655_s27 = sld [smem:[#allocation17_spill]]  ;;  %28 = sbr.rel (!%p26_p10) target bundleno = 16 (0x10), region = 175 }
0x13e5   :  { %2254 = vsyncpa [#allocation5], 1 }
0x13e6   :  { %2256 = vsyncpa [#allocation5 + $0x1], 1 }

</bundles_post_ra>
